<compile_context>
chip_gen: v5e
topology: v5e:2x2
jax: 0.10.0
libtpu: 0.0.40
codegen_flags: <defaults>
</compile_context>

<pallas_src>
import jax
import jax.numpy as jnp
from jax.experimental import pallas as pl
from jax.experimental.pallas import tpu as pltpu


def lstm_ae_kernel(xT_ref, enc_ref, dec_ref, out_ref):
    """Whole forward pass in one invocation.

    xT_ref : (T, B)       input sequence, time-major (feature dim of 1 squeezed)
    enc_ref: (H+2, 4H)    encoder pack: rows [0:H]=whe, [H]=wie, [H+1]=be
                          gate cols [i|f|o|g]; i/f/o cols pre-scaled by 0.5
    dec_ref: (2H+2, 4H)   decoder pack: rows [0:H]=whd, [H:2H]=wid, [2H]=bd,
                          [2H+1]=wfb (cols [0:H]=final-Linear w, col [H]=bias)
    out_ref: (B, T)       output sequence (feature dim of 1 squeezed)
    """
    T, B = xT_ref.shape
    H4 = enc_ref.shape[1]
    H = H4 // 4

    # --- static slices of the packed parameter blocks (one-time loads) ---
    whe = enc_ref[0:H, :]                      # (H, 4H)   sublane-aligned
    wie = enc_ref[H:H + 1, :]                  # (1, 4H)
    be = enc_ref[H + 1:H + 2, :]               # (1, 4H)
    whd = dec_ref[0:H, :]                      # (H, 4H)   sublane-aligned
    wid = dec_ref[H:2 * H, :]                  # (H, 4H)   sublane-aligned
    bd = dec_ref[2 * H:2 * H + 1, :]           # (1, 4H)
    wfb = dec_ref[2 * H + 1:2 * H + 2, :]      # (1, 4H)
    wf = wfb[:, 0:H]                           # (1, H)   final Linear weight
    bf = wfb[:, H:H + 1]                       # (1, 1)   final Linear bias

    def lstm_step(gates, c):
        # i/f/o gate columns were pre-scaled by 0.5, so ONE tanh over the
        # full (B,4H) vreg yields sigmoid(z) = 0.5*tanh(z/2)+0.5 on the VPU.
        t_all = jnp.tanh(gates)                # (B, 4H) -- single EUP push
        sig = 0.5 * t_all[:, :3 * H] + 0.5
        i_g = sig[:, 0 * H:1 * H]
        f_g = sig[:, 1 * H:2 * H]
        o_g = sig[:, 2 * H:3 * H]
        g_g = t_all[:, 3 * H:]
        c_new = f_g * c + i_g * g_g
        h_new = o_g * jnp.tanh(c_new)
        return h_new, c_new

    # Hoisted x-dependent gate input + bias, built once in (T, B, 4H) layout
    # so each step's operand is a (B,4H) slab aligned with the matmul output.
    gates_x = (xT_ref[...][:, :, None] * wie.reshape(1, 1, H4)
               + be.reshape(1, 1, H4))                       # (T, B, 4H)

    # ---------------- encoder LSTM ----------------
    h = jnp.zeros((B, H), jnp.float32)
    c = jnp.zeros((B, H), jnp.float32)
    for t in range(T):  # T is small & static -> full unroll
        gates = gates_x[t] + jnp.dot(
            h, whe, preferred_element_type=jnp.float32)
        h, c = lstm_step(gates, c)

    # z = final encoder hidden, repeated at every decoder step, so its gate
    # contribution (+ bias) is constant across the decoder loop.
    gx = jnp.dot(h, wid, preferred_element_type=jnp.float32) + bd    # (B, 4H)

    # ---------------- decoder LSTM + per-step output projection ----------
    hd = jnp.zeros((B, H), jnp.float32)
    cd = jnp.zeros((B, H), jnp.float32)
    y_cols = []
    for t in range(T):
        gates = gx + jnp.dot(hd, whd, preferred_element_type=jnp.float32)
        hd, cd = lstm_step(gates, cd)
        # lane-reduce off the recurrence chain; stays vreg-resident
        y_cols.append(jnp.sum(hd * wf, axis=-1, keepdims=True))      # (B, 1)

    # -------- single full-width store of the projected sequence ----------
    out_ref[...] = jnp.concatenate(y_cols, axis=1) + bf              # (B, T)


def lstm_ae_forward(x, params):
    """x: (B, T, 1) float32  ->  (B, T, 1) float32."""
    B, T, F = x.shape
    assert F == 1
    xT = x[..., 0].T                                         # (T, B) time-major

    vmem_spec = pl.BlockSpec(memory_space=pltpu.MemorySpace.VMEM)
    out2d = pl.pallas_call(
        lstm_ae_kernel,
        out_shape=jax.ShapeDtypeStruct((B, T), jnp.float32),
        in_specs=[vmem_spec] * 3,
        out_specs=vmem_spec,
    )(xT, params["enc"], params["dec"])
    return out2d[..., None]                                  # (B, T, 1)


# ----------------------------------------------------------------------------
# Parameters: raw PyTorch-layout weights (for the reference) + packed kernel
# layout (transposed, gate columns reordered [i,f,g,o] -> [i,f,o,g], biases
# combined, i/f/o columns pre-scaled by 0.5, all concatenated into two blocks).
# ----------------------------------------------------------------------------

def make_raw_params(key, hidden):
    """Deterministic PyTorch-style init: U(-1/sqrt(H), 1/sqrt(H))."""
    H = hidden
    k = 1.0 / jnp.sqrt(jnp.float32(H))
    keys = jax.random.split(key, 10)

    def u(kk, shape):
        return jax.random.uniform(kk, shape, jnp.float32, -k, k)

    return {
        # encoder LSTM (input size 1); gate row order [i, f, g, o]
        "w_ih_e": u(keys[0], (4 * H, 1)),
        "w_hh_e": u(keys[1], (4 * H, H)),
        "b_ih_e": u(keys[2], (4 * H,)),
        "b_hh_e": u(keys[3], (4 * H,)),
        # decoder LSTM (input size H)
        "w_ih_d": u(keys[4], (4 * H, H)),
        "w_hh_d": u(keys[5], (4 * H, H)),
        "b_ih_d": u(keys[6], (4 * H,)),
        "b_hh_d": u(keys[7], (4 * H,)),
        # final Linear H -> 1
        "w_f": u(keys[8], (1, H)),
        "b_f": u(keys[9], (1,)),
    }


def pack_params(raw, hidden):
    """Repack raw PyTorch weights into the kernel layout."""
    H = hidden
    # Pre-scale for sigmoid(z) = 0.5*tanh(z/2)+0.5: halve i/f/o gate columns.
    col_scale = jnp.concatenate(
        [jnp.full((3 * H,), 0.5, jnp.float32), jnp.ones((H,), jnp.float32)])

    def reorder(m):
        # PyTorch gate rows [i, f, g, o] -> kernel rows [i, f, o, g]
        i, f, g, o = jnp.split(m, 4, axis=0)
        return jnp.concatenate([i, f, o, g], axis=0)

    def pack_lstm(w_ih, w_hh, b_ih, b_hh):
        wi = reorder(w_ih).T * col_scale[None, :]            # (in, 4H)
        wh = reorder(w_hh).T * col_scale[None, :]            # (H, 4H)
        b = reorder(b_ih + b_hh).reshape(1, 4 * H) * col_scale[None, :]
        return wi, wh, b

    wie, whe, be = pack_lstm(raw["w_ih_e"], raw["w_hh_e"],
                             raw["b_ih_e"], raw["b_hh_e"])
    wid, whd, bd = pack_lstm(raw["w_ih_d"], raw["w_hh_d"],
                             raw["b_ih_d"], raw["b_hh_d"])

    # Final Linear packed into one (1, 4H) row: cols [0:H]=w, col [H]=bias.
    wfb = jnp.zeros((1, 4 * H), jnp.float32)
    wfb = wfb.at[0, :H].set(raw["w_f"][0])
    wfb = wfb.at[0, H].set(raw["b_f"][0])

    enc = jnp.concatenate([whe, wie, be], axis=0)            # (H+2, 4H)
    dec = jnp.concatenate([whd, wid, bd, wfb], axis=0)       # (2H+2, 4H)
    return {"enc": enc, "dec": dec}


# ----------------------------------------------------------------------------
# Pure-JAX reference implementing the PyTorch module semantics from the raw
# (un-reordered, un-scaled) weights, for correctness checking.
# ----------------------------------------------------------------------------

def lstm_ae_reference(x, raw):
    B, T, _ = x.shape
    H = raw["w_hh_e"].shape[1]

    def lstm_cell(x_t, h, c, w_ih, w_hh, b_ih, b_hh):
        g = x_t @ w_ih.T + h @ w_hh.T + b_ih + b_hh
        i = jax.nn.sigmoid(g[:, 0 * H:1 * H])
        f = jax.nn.sigmoid(g[:, 1 * H:2 * H])
        gg = jnp.tanh(g[:, 2 * H:3 * H])
        o = jax.nn.sigmoid(g[:, 3 * H:4 * H])
        c = f * c + i * gg
        h = o * jnp.tanh(c)
        return h, c

    h = jnp.zeros((B, H), jnp.float32)
    c = jnp.zeros((B, H), jnp.float32)
    for t in range(T):
        h, c = lstm_cell(x[:, t, :], h, c,
                         raw["w_ih_e"], raw["w_hh_e"],
                         raw["b_ih_e"], raw["b_hh_e"])
    z = h
    hd = jnp.zeros((B, H), jnp.float32)
    cd = jnp.zeros((B, H), jnp.float32)
    ys = []
    for t in range(T):
        hd, cd = lstm_cell(z, hd, cd,
                           raw["w_ih_d"], raw["w_hh_d"],
                           raw["b_ih_d"], raw["b_hh_d"])
        ys.append(hd @ raw["w_f"].T + raw["b_f"])
    return jnp.stack(ys, axis=1)                             # (B, T, 1)


if __name__ == "__main__":
    B, T, H = 2, 8, 32
    key = jax.random.PRNGKey(0)
    k_x, k_p = jax.random.split(key)

    x = jax.random.normal(k_x, (B, T, 1), jnp.float32)
    raw = make_raw_params(k_p, H)
    params = pack_params(raw, H)

    out = lstm_ae_forward(x, params)
    out = jax.block_until_ready(out)

    ref = lstm_ae_reference(x, raw)
    assert out.shape == (B, T, 1)
    err = jnp.max(jnp.abs(out - ref))
    assert jnp.allclose(out, ref, atol=1e-5, rtol=1e-5), f"max abs err {err}"

    print("KERNEL_OK")
</pallas_src>

<mosaic_0001>
module attributes {stable_mosaic.version = 11 : i64} {
  func.func @lstm_ae_kernel(%arg0: memref<8x2xf32, #tpu.memory_space<vmem>>, %arg1: memref<34x128xf32, #tpu.memory_space<vmem>>, %arg2: memref<66x128xf32, #tpu.memory_space<vmem>>, %arg3: memref<2x8xf32, #tpu.memory_space<vmem>>) attributes {dimension_semantics = [], scalar_prefetch = 0 : i64, scratch_operands = 0 : i64, tpu.core_type = #tpu.core_type<tc>} {
    %c0 = arith.constant 0 : index
    %c0_0 = arith.constant 0 : index
    %0 = vector.load %arg1[%c0, %c0_0] : memref<34x128xf32, #tpu.memory_space<vmem>>, vector<32x128xf32>
    %c32 = arith.constant 32 : index
    %c0_1 = arith.constant 0 : index
    %1 = vector.load %arg1[%c32, %c0_1] : memref<34x128xf32, #tpu.memory_space<vmem>>, vector<1x128xf32>
    %c33 = arith.constant 33 : index
    %c0_2 = arith.constant 0 : index
    %2 = vector.load %arg1[%c33, %c0_2] : memref<34x128xf32, #tpu.memory_space<vmem>>, vector<1x128xf32>
    %c0_3 = arith.constant 0 : index
    %c0_4 = arith.constant 0 : index
    %3 = vector.load %arg2[%c0_3, %c0_4] : memref<66x128xf32, #tpu.memory_space<vmem>>, vector<32x128xf32>
    %c32_5 = arith.constant 32 : index
    %c0_6 = arith.constant 0 : index
    %4 = vector.load %arg2[%c32_5, %c0_6] : memref<66x128xf32, #tpu.memory_space<vmem>>, vector<32x128xf32>
    %c64 = arith.constant 64 : index
    %c0_7 = arith.constant 0 : index
    %5 = vector.load %arg2[%c64, %c0_7] : memref<66x128xf32, #tpu.memory_space<vmem>>, vector<1x128xf32>
    %c65 = arith.constant 65 : index
    %c0_8 = arith.constant 0 : index
    %6 = vector.load %arg2[%c65, %c0_8] : memref<66x128xf32, #tpu.memory_space<vmem>>, vector<1x128xf32>
    %7 = vector.extract_strided_slice %6 {offsets = [0, 0], sizes = [1, 32], strides = [1, 1]} : vector<1x128xf32> to vector<1x32xf32>
    %8 = vector.extract_strided_slice %6 {offsets = [0, 32], sizes = [1, 1], strides = [1, 1]} : vector<1x128xf32> to vector<1x1xf32>
    %c0_9 = arith.constant 0 : index
    %c0_10 = arith.constant 0 : index
    %9 = vector.load %arg0[%c0_9, %c0_10] : memref<8x2xf32, #tpu.memory_space<vmem>>, vector<8x2xf32>
    %10 = vector.shape_cast %9 : vector<8x2xf32> to vector<8x2x1xf32>
    %11 = vector.shape_cast %1 : vector<1x128xf32> to vector<1x1x128xf32>
    %12 = vector.broadcast %10 : vector<8x2x1xf32> to vector<8x2x128xf32>
    %13 = vector.broadcast %11 : vector<1x1x128xf32> to vector<8x2x128xf32>
    %14 = arith.mulf %12, %13 : vector<8x2x128xf32>
    %15 = vector.shape_cast %2 : vector<1x128xf32> to vector<1x1x128xf32>
    %16 = vector.broadcast %15 : vector<1x1x128xf32> to vector<8x2x128xf32>
    %17 = arith.addf %14, %16 : vector<8x2x128xf32>
    %cst = arith.constant 0.000000e+00 : f32
    %18 = vector.broadcast %cst : f32 to vector<2x32xf32>
    %cst_11 = arith.constant 0.000000e+00 : f32
    %19 = vector.broadcast %cst_11 : f32 to vector<2x32xf32>
    %20 = vector.extract_strided_slice %17 {offsets = [0, 0, 0], sizes = [1, 2, 128], strides = [1, 1, 1]} : vector<8x2x128xf32> to vector<1x2x128xf32>
    %21 = vector.shape_cast %20 : vector<1x2x128xf32> to vector<2x128xf32>
    %cst_12 = arith.constant dense<0.000000e+00> : vector<2x128xf32>
    %22 = tpu.matmul %18, %0, %cst_12 {dimension_numbers = #tpu.dot_dimension_numbers<[1], [0], [0], [1], [0, 0, 1, 1], [], []>} : vector<2x32xf32>, vector<32x128xf32>, vector<2x128xf32> -> vector<2x128xf32>
    %23 = arith.addf %21, %22 : vector<2x128xf32>
    %24 = math.tanh %23 : vector<2x128xf32>
    %25 = vector.extract_strided_slice %24 {offsets = [0, 0], sizes = [2, 96], strides = [1, 1]} : vector<2x128xf32> to vector<2x96xf32>
    %cst_13 = arith.constant 5.000000e-01 : f32
    %26 = vector.broadcast %cst_13 : f32 to vector<2x96xf32>
    %27 = arith.mulf %26, %25 : vector<2x96xf32>
    %cst_14 = arith.constant 5.000000e-01 : f32
    %28 = vector.broadcast %cst_14 : f32 to vector<2x96xf32>
    %29 = arith.addf %27, %28 : vector<2x96xf32>
    %30 = vector.extract_strided_slice %29 {offsets = [0, 0], sizes = [2, 32], strides = [1, 1]} : vector<2x96xf32> to vector<2x32xf32>
    %31 = vector.extract_strided_slice %29 {offsets = [0, 32], sizes = [2, 32], strides = [1, 1]} : vector<2x96xf32> to vector<2x32xf32>
    %32 = vector.extract_strided_slice %29 {offsets = [0, 64], sizes = [2, 32], strides = [1, 1]} : vector<2x96xf32> to vector<2x32xf32>
    %33 = vector.extract_strided_slice %24 {offsets = [0, 96], sizes = [2, 32], strides = [1, 1]} : vector<2x128xf32> to vector<2x32xf32>
    %34 = arith.mulf %31, %19 : vector<2x32xf32>
    %35 = arith.mulf %30, %33 : vector<2x32xf32>
    %36 = arith.addf %34, %35 : vector<2x32xf32>
    %37 = math.tanh %36 : vector<2x32xf32>
    %38 = arith.mulf %32, %37 : vector<2x32xf32>
    %39 = vector.extract_strided_slice %17 {offsets = [1, 0, 0], sizes = [1, 2, 128], strides = [1, 1, 1]} : vector<8x2x128xf32> to vector<1x2x128xf32>
    %40 = vector.shape_cast %39 : vector<1x2x128xf32> to vector<2x128xf32>
    %cst_15 = arith.constant dense<0.000000e+00> : vector<2x128xf32>
    %41 = tpu.matmul %38, %0, %cst_15 {dimension_numbers = #tpu.dot_dimension_numbers<[1], [0], [0], [1], [0, 0, 1, 1], [], []>} : vector<2x32xf32>, vector<32x128xf32>, vector<2x128xf32> -> vector<2x128xf32>
    %42 = arith.addf %40, %41 : vector<2x128xf32>
    %43 = math.tanh %42 : vector<2x128xf32>
    %44 = vector.extract_strided_slice %43 {offsets = [0, 0], sizes = [2, 96], strides = [1, 1]} : vector<2x128xf32> to vector<2x96xf32>
    %cst_16 = arith.constant 5.000000e-01 : f32
    %45 = vector.broadcast %cst_16 : f32 to vector<2x96xf32>
    %46 = arith.mulf %45, %44 : vector<2x96xf32>
    %cst_17 = arith.constant 5.000000e-01 : f32
    %47 = vector.broadcast %cst_17 : f32 to vector<2x96xf32>
    %48 = arith.addf %46, %47 : vector<2x96xf32>
    %49 = vector.extract_strided_slice %48 {offsets = [0, 0], sizes = [2, 32], strides = [1, 1]} : vector<2x96xf32> to vector<2x32xf32>
    %50 = vector.extract_strided_slice %48 {offsets = [0, 32], sizes = [2, 32], strides = [1, 1]} : vector<2x96xf32> to vector<2x32xf32>
    %51 = vector.extract_strided_slice %48 {offsets = [0, 64], sizes = [2, 32], strides = [1, 1]} : vector<2x96xf32> to vector<2x32xf32>
    %52 = vector.extract_strided_slice %43 {offsets = [0, 96], sizes = [2, 32], strides = [1, 1]} : vector<2x128xf32> to vector<2x32xf32>
    %53 = arith.mulf %50, %36 : vector<2x32xf32>
    %54 = arith.mulf %49, %52 : vector<2x32xf32>
    %55 = arith.addf %53, %54 : vector<2x32xf32>
    %56 = math.tanh %55 : vector<2x32xf32>
    %57 = arith.mulf %51, %56 : vector<2x32xf32>
    %58 = vector.extract_strided_slice %17 {offsets = [2, 0, 0], sizes = [1, 2, 128], strides = [1, 1, 1]} : vector<8x2x128xf32> to vector<1x2x128xf32>
    %59 = vector.shape_cast %58 : vector<1x2x128xf32> to vector<2x128xf32>
    %cst_18 = arith.constant dense<0.000000e+00> : vector<2x128xf32>
    %60 = tpu.matmul %57, %0, %cst_18 {dimension_numbers = #tpu.dot_dimension_numbers<[1], [0], [0], [1], [0, 0, 1, 1], [], []>} : vector<2x32xf32>, vector<32x128xf32>, vector<2x128xf32> -> vector<2x128xf32>
    %61 = arith.addf %59, %60 : vector<2x128xf32>
    %62 = math.tanh %61 : vector<2x128xf32>
    %63 = vector.extract_strided_slice %62 {offsets = [0, 0], sizes = [2, 96], strides = [1, 1]} : vector<2x128xf32> to vector<2x96xf32>
    %cst_19 = arith.constant 5.000000e-01 : f32
    %64 = vector.broadcast %cst_19 : f32 to vector<2x96xf32>
    %65 = arith.mulf %64, %63 : vector<2x96xf32>
    %cst_20 = arith.constant 5.000000e-01 : f32
    %66 = vector.broadcast %cst_20 : f32 to vector<2x96xf32>
    %67 = arith.addf %65, %66 : vector<2x96xf32>
    %68 = vector.extract_strided_slice %67 {offsets = [0, 0], sizes = [2, 32], strides = [1, 1]} : vector<2x96xf32> to vector<2x32xf32>
    %69 = vector.extract_strided_slice %67 {offsets = [0, 32], sizes = [2, 32], strides = [1, 1]} : vector<2x96xf32> to vector<2x32xf32>
    %70 = vector.extract_strided_slice %67 {offsets = [0, 64], sizes = [2, 32], strides = [1, 1]} : vector<2x96xf32> to vector<2x32xf32>
    %71 = vector.extract_strided_slice %62 {offsets = [0, 96], sizes = [2, 32], strides = [1, 1]} : vector<2x128xf32> to vector<2x32xf32>
    %72 = arith.mulf %69, %55 : vector<2x32xf32>
    %73 = arith.mulf %68, %71 : vector<2x32xf32>
    %74 = arith.addf %72, %73 : vector<2x32xf32>
    %75 = math.tanh %74 : vector<2x32xf32>
    %76 = arith.mulf %70, %75 : vector<2x32xf32>
    %77 = vector.extract_strided_slice %17 {offsets = [3, 0, 0], sizes = [1, 2, 128], strides = [1, 1, 1]} : vector<8x2x128xf32> to vector<1x2x128xf32>
    %78 = vector.shape_cast %77 : vector<1x2x128xf32> to vector<2x128xf32>
    %cst_21 = arith.constant dense<0.000000e+00> : vector<2x128xf32>
    %79 = tpu.matmul %76, %0, %cst_21 {dimension_numbers = #tpu.dot_dimension_numbers<[1], [0], [0], [1], [0, 0, 1, 1], [], []>} : vector<2x32xf32>, vector<32x128xf32>, vector<2x128xf32> -> vector<2x128xf32>
    %80 = arith.addf %78, %79 : vector<2x128xf32>
    %81 = math.tanh %80 : vector<2x128xf32>
    %82 = vector.extract_strided_slice %81 {offsets = [0, 0], sizes = [2, 96], strides = [1, 1]} : vector<2x128xf32> to vector<2x96xf32>
    %cst_22 = arith.constant 5.000000e-01 : f32
    %83 = vector.broadcast %cst_22 : f32 to vector<2x96xf32>
    %84 = arith.mulf %83, %82 : vector<2x96xf32>
    %cst_23 = arith.constant 5.000000e-01 : f32
    %85 = vector.broadcast %cst_23 : f32 to vector<2x96xf32>
    %86 = arith.addf %84, %85 : vector<2x96xf32>
    %87 = vector.extract_strided_slice %86 {offsets = [0, 0], sizes = [2, 32], strides = [1, 1]} : vector<2x96xf32> to vector<2x32xf32>
    %88 = vector.extract_strided_slice %86 {offsets = [0, 32], sizes = [2, 32], strides = [1, 1]} : vector<2x96xf32> to vector<2x32xf32>
    %89 = vector.extract_strided_slice %86 {offsets = [0, 64], sizes = [2, 32], strides = [1, 1]} : vector<2x96xf32> to vector<2x32xf32>
    %90 = vector.extract_strided_slice %81 {offsets = [0, 96], sizes = [2, 32], strides = [1, 1]} : vector<2x128xf32> to vector<2x32xf32>
    %91 = arith.mulf %88, %74 : vector<2x32xf32>
    %92 = arith.mulf %87, %90 : vector<2x32xf32>
    %93 = arith.addf %91, %92 : vector<2x32xf32>
    %94 = math.tanh %93 : vector<2x32xf32>
    %95 = arith.mulf %89, %94 : vector<2x32xf32>
    %96 = vector.extract_strided_slice %17 {offsets = [4, 0, 0], sizes = [1, 2, 128], strides = [1, 1, 1]} : vector<8x2x128xf32> to vector<1x2x128xf32>
    %97 = vector.shape_cast %96 : vector<1x2x128xf32> to vector<2x128xf32>
    %cst_24 = arith.constant dense<0.000000e+00> : vector<2x128xf32>
    %98 = tpu.matmul %95, %0, %cst_24 {dimension_numbers = #tpu.dot_dimension_numbers<[1], [0], [0], [1], [0, 0, 1, 1], [], []>} : vector<2x32xf32>, vector<32x128xf32>, vector<2x128xf32> -> vector<2x128xf32>
    %99 = arith.addf %97, %98 : vector<2x128xf32>
    %100 = math.tanh %99 : vector<2x128xf32>
    %101 = vector.extract_strided_slice %100 {offsets = [0, 0], sizes = [2, 96], strides = [1, 1]} : vector<2x128xf32> to vector<2x96xf32>
    %cst_25 = arith.constant 5.000000e-01 : f32
    %102 = vector.broadcast %cst_25 : f32 to vector<2x96xf32>
    %103 = arith.mulf %102, %101 : vector<2x96xf32>
    %cst_26 = arith.constant 5.000000e-01 : f32
    %104 = vector.broadcast %cst_26 : f32 to vector<2x96xf32>
    %105 = arith.addf %103, %104 : vector<2x96xf32>
    %106 = vector.extract_strided_slice %105 {offsets = [0, 0], sizes = [2, 32], strides = [1, 1]} : vector<2x96xf32> to vector<2x32xf32>
    %107 = vector.extract_strided_slice %105 {offsets = [0, 32], sizes = [2, 32], strides = [1, 1]} : vector<2x96xf32> to vector<2x32xf32>
    %108 = vector.extract_strided_slice %105 {offsets = [0, 64], sizes = [2, 32], strides = [1, 1]} : vector<2x96xf32> to vector<2x32xf32>
    %109 = vector.extract_strided_slice %100 {offsets = [0, 96], sizes = [2, 32], strides = [1, 1]} : vector<2x128xf32> to vector<2x32xf32>
    %110 = arith.mulf %107, %93 : vector<2x32xf32>
    %111 = arith.mulf %106, %109 : vector<2x32xf32>
    %112 = arith.addf %110, %111 : vector<2x32xf32>
    %113 = math.tanh %112 : vector<2x32xf32>
    %114 = arith.mulf %108, %113 : vector<2x32xf32>
    %115 = vector.extract_strided_slice %17 {offsets = [5, 0, 0], sizes = [1, 2, 128], strides = [1, 1, 1]} : vector<8x2x128xf32> to vector<1x2x128xf32>
    %116 = vector.shape_cast %115 : vector<1x2x128xf32> to vector<2x128xf32>
    %cst_27 = arith.constant dense<0.000000e+00> : vector<2x128xf32>
    %117 = tpu.matmul %114, %0, %cst_27 {dimension_numbers = #tpu.dot_dimension_numbers<[1], [0], [0], [1], [0, 0, 1, 1], [], []>} : vector<2x32xf32>, vector<32x128xf32>, vector<2x128xf32> -> vector<2x128xf32>
    %118 = arith.addf %116, %117 : vector<2x128xf32>
    %119 = math.tanh %118 : vector<2x128xf32>
    %120 = vector.extract_strided_slice %119 {offsets = [0, 0], sizes = [2, 96], strides = [1, 1]} : vector<2x128xf32> to vector<2x96xf32>
    %cst_28 = arith.constant 5.000000e-01 : f32
    %121 = vector.broadcast %cst_28 : f32 to vector<2x96xf32>
    %122 = arith.mulf %121, %120 : vector<2x96xf32>
    %cst_29 = arith.constant 5.000000e-01 : f32
    %123 = vector.broadcast %cst_29 : f32 to vector<2x96xf32>
    %124 = arith.addf %122, %123 : vector<2x96xf32>
    %125 = vector.extract_strided_slice %124 {offsets = [0, 0], sizes = [2, 32], strides = [1, 1]} : vector<2x96xf32> to vector<2x32xf32>
    %126 = vector.extract_strided_slice %124 {offsets = [0, 32], sizes = [2, 32], strides = [1, 1]} : vector<2x96xf32> to vector<2x32xf32>
    %127 = vector.extract_strided_slice %124 {offsets = [0, 64], sizes = [2, 32], strides = [1, 1]} : vector<2x96xf32> to vector<2x32xf32>
    %128 = vector.extract_strided_slice %119 {offsets = [0, 96], sizes = [2, 32], strides = [1, 1]} : vector<2x128xf32> to vector<2x32xf32>
    %129 = arith.mulf %126, %112 : vector<2x32xf32>
    %130 = arith.mulf %125, %128 : vector<2x32xf32>
    %131 = arith.addf %129, %130 : vector<2x32xf32>
    %132 = math.tanh %131 : vector<2x32xf32>
    %133 = arith.mulf %127, %132 : vector<2x32xf32>
    %134 = vector.extract_strided_slice %17 {offsets = [6, 0, 0], sizes = [1, 2, 128], strides = [1, 1, 1]} : vector<8x2x128xf32> to vector<1x2x128xf32>
    %135 = vector.shape_cast %134 : vector<1x2x128xf32> to vector<2x128xf32>
    %cst_30 = arith.constant dense<0.000000e+00> : vector<2x128xf32>
    %136 = tpu.matmul %133, %0, %cst_30 {dimension_numbers = #tpu.dot_dimension_numbers<[1], [0], [0], [1], [0, 0, 1, 1], [], []>} : vector<2x32xf32>, vector<32x128xf32>, vector<2x128xf32> -> vector<2x128xf32>
    %137 = arith.addf %135, %136 : vector<2x128xf32>
    %138 = math.tanh %137 : vector<2x128xf32>
    %139 = vector.extract_strided_slice %138 {offsets = [0, 0], sizes = [2, 96], strides = [1, 1]} : vector<2x128xf32> to vector<2x96xf32>
    %cst_31 = arith.constant 5.000000e-01 : f32
    %140 = vector.broadcast %cst_31 : f32 to vector<2x96xf32>
    %141 = arith.mulf %140, %139 : vector<2x96xf32>
    %cst_32 = arith.constant 5.000000e-01 : f32
    %142 = vector.broadcast %cst_32 : f32 to vector<2x96xf32>
    %143 = arith.addf %141, %142 : vector<2x96xf32>
    %144 = vector.extract_strided_slice %143 {offsets = [0, 0], sizes = [2, 32], strides = [1, 1]} : vector<2x96xf32> to vector<2x32xf32>
    %145 = vector.extract_strided_slice %143 {offsets = [0, 32], sizes = [2, 32], strides = [1, 1]} : vector<2x96xf32> to vector<2x32xf32>
    %146 = vector.extract_strided_slice %143 {offsets = [0, 64], sizes = [2, 32], strides = [1, 1]} : vector<2x96xf32> to vector<2x32xf32>
    %147 = vector.extract_strided_slice %138 {offsets = [0, 96], sizes = [2, 32], strides = [1, 1]} : vector<2x128xf32> to vector<2x32xf32>
    %148 = arith.mulf %145, %131 : vector<2x32xf32>
    %149 = arith.mulf %144, %147 : vector<2x32xf32>
    %150 = arith.addf %148, %149 : vector<2x32xf32>
    %151 = math.tanh %150 : vector<2x32xf32>
    %152 = arith.mulf %146, %151 : vector<2x32xf32>
    %153 = vector.extract_strided_slice %17 {offsets = [7, 0, 0], sizes = [1, 2, 128], strides = [1, 1, 1]} : vector<8x2x128xf32> to vector<1x2x128xf32>
    %154 = vector.shape_cast %153 : vector<1x2x128xf32> to vector<2x128xf32>
    %cst_33 = arith.constant dense<0.000000e+00> : vector<2x128xf32>
    %155 = tpu.matmul %152, %0, %cst_33 {dimension_numbers = #tpu.dot_dimension_numbers<[1], [0], [0], [1], [0, 0, 1, 1], [], []>} : vector<2x32xf32>, vector<32x128xf32>, vector<2x128xf32> -> vector<2x128xf32>
    %156 = arith.addf %154, %155 : vector<2x128xf32>
    %157 = math.tanh %156 : vector<2x128xf32>
    %158 = vector.extract_strided_slice %157 {offsets = [0, 0], sizes = [2, 96], strides = [1, 1]} : vector<2x128xf32> to vector<2x96xf32>
    %cst_34 = arith.constant 5.000000e-01 : f32
    %159 = vector.broadcast %cst_34 : f32 to vector<2x96xf32>
    %160 = arith.mulf %159, %158 : vector<2x96xf32>
    %cst_35 = arith.constant 5.000000e-01 : f32
    %161 = vector.broadcast %cst_35 : f32 to vector<2x96xf32>
    %162 = arith.addf %160, %161 : vector<2x96xf32>
    %163 = vector.extract_strided_slice %162 {offsets = [0, 0], sizes = [2, 32], strides = [1, 1]} : vector<2x96xf32> to vector<2x32xf32>
    %164 = vector.extract_strided_slice %162 {offsets = [0, 32], sizes = [2, 32], strides = [1, 1]} : vector<2x96xf32> to vector<2x32xf32>
    %165 = vector.extract_strided_slice %162 {offsets = [0, 64], sizes = [2, 32], strides = [1, 1]} : vector<2x96xf32> to vector<2x32xf32>
    %166 = vector.extract_strided_slice %157 {offsets = [0, 96], sizes = [2, 32], strides = [1, 1]} : vector<2x128xf32> to vector<2x32xf32>
    %167 = arith.mulf %164, %150 : vector<2x32xf32>
    %168 = arith.mulf %163, %166 : vector<2x32xf32>
    %169 = arith.addf %167, %168 : vector<2x32xf32>
    %170 = math.tanh %169 : vector<2x32xf32>
    %171 = arith.mulf %165, %170 : vector<2x32xf32>
    %cst_36 = arith.constant dense<0.000000e+00> : vector<2x128xf32>
    %172 = tpu.matmul %171, %4, %cst_36 {dimension_numbers = #tpu.dot_dimension_numbers<[1], [0], [0], [1], [0, 0, 1, 1], [], []>} : vector<2x32xf32>, vector<32x128xf32>, vector<2x128xf32> -> vector<2x128xf32>
    %173 = vector.broadcast %5 : vector<1x128xf32> to vector<2x128xf32>
    %174 = arith.addf %172, %173 : vector<2x128xf32>
    %cst_37 = arith.constant 0.000000e+00 : f32
    %175 = vector.broadcast %cst_37 : f32 to vector<2x32xf32>
    %cst_38 = arith.constant 0.000000e+00 : f32
    %176 = vector.broadcast %cst_38 : f32 to vector<2x32xf32>
    %cst_39 = arith.constant dense<0.000000e+00> : vector<2x128xf32>
    %177 = tpu.matmul %175, %3, %cst_39 {dimension_numbers = #tpu.dot_dimension_numbers<[1], [0], [0], [1], [0, 0, 1, 1], [], []>} : vector<2x32xf32>, vector<32x128xf32>, vector<2x128xf32> -> vector<2x128xf32>
    %178 = arith.addf %174, %177 : vector<2x128xf32>
    %179 = math.tanh %178 : vector<2x128xf32>
    %180 = vector.extract_strided_slice %179 {offsets = [0, 0], sizes = [2, 96], strides = [1, 1]} : vector<2x128xf32> to vector<2x96xf32>
    %cst_40 = arith.constant 5.000000e-01 : f32
    %181 = vector.broadcast %cst_40 : f32 to vector<2x96xf32>
    %182 = arith.mulf %181, %180 : vector<2x96xf32>
    %cst_41 = arith.constant 5.000000e-01 : f32
    %183 = vector.broadcast %cst_41 : f32 to vector<2x96xf32>
    %184 = arith.addf %182, %183 : vector<2x96xf32>
    %185 = vector.extract_strided_slice %184 {offsets = [0, 0], sizes = [2, 32], strides = [1, 1]} : vector<2x96xf32> to vector<2x32xf32>
    %186 = vector.extract_strided_slice %184 {offsets = [0, 32], sizes = [2, 32], strides = [1, 1]} : vector<2x96xf32> to vector<2x32xf32>
    %187 = vector.extract_strided_slice %184 {offsets = [0, 64], sizes = [2, 32], strides = [1, 1]} : vector<2x96xf32> to vector<2x32xf32>
    %188 = vector.extract_strided_slice %179 {offsets = [0, 96], sizes = [2, 32], strides = [1, 1]} : vector<2x128xf32> to vector<2x32xf32>
    %189 = arith.mulf %186, %176 : vector<2x32xf32>
    %190 = arith.mulf %185, %188 : vector<2x32xf32>
    %191 = arith.addf %189, %190 : vector<2x32xf32>
    %192 = math.tanh %191 : vector<2x32xf32>
    %193 = arith.mulf %187, %192 : vector<2x32xf32>
    %194 = vector.broadcast %7 : vector<1x32xf32> to vector<2x32xf32>
    %195 = arith.mulf %193, %194 : vector<2x32xf32>
    %cst_42 = arith.constant dense<0.000000e+00> : vector<2xf32>
    %196 = vector.multi_reduction <add>, %195, %cst_42 [1] : vector<2x32xf32> to vector<2xf32>
    %197 = vector.shape_cast %196 : vector<2xf32> to vector<2x1xf32>
    %cst_43 = arith.constant dense<0.000000e+00> : vector<2x128xf32>
    %198 = tpu.matmul %193, %3, %cst_43 {dimension_numbers = #tpu.dot_dimension_numbers<[1], [0], [0], [1], [0, 0, 1, 1], [], []>} : vector<2x32xf32>, vector<32x128xf32>, vector<2x128xf32> -> vector<2x128xf32>
    %199 = arith.addf %174, %198 : vector<2x128xf32>
    %200 = math.tanh %199 : vector<2x128xf32>
    %201 = vector.extract_strided_slice %200 {offsets = [0, 0], sizes = [2, 96], strides = [1, 1]} : vector<2x128xf32> to vector<2x96xf32>
    %cst_44 = arith.constant 5.000000e-01 : f32
    %202 = vector.broadcast %cst_44 : f32 to vector<2x96xf32>
    %203 = arith.mulf %202, %201 : vector<2x96xf32>
    %cst_45 = arith.constant 5.000000e-01 : f32
    %204 = vector.broadcast %cst_45 : f32 to vector<2x96xf32>
    %205 = arith.addf %203, %204 : vector<2x96xf32>
    %206 = vector.extract_strided_slice %205 {offsets = [0, 0], sizes = [2, 32], strides = [1, 1]} : vector<2x96xf32> to vector<2x32xf32>
    %207 = vector.extract_strided_slice %205 {offsets = [0, 32], sizes = [2, 32], strides = [1, 1]} : vector<2x96xf32> to vector<2x32xf32>
    %208 = vector.extract_strided_slice %205 {offsets = [0, 64], sizes = [2, 32], strides = [1, 1]} : vector<2x96xf32> to vector<2x32xf32>
    %209 = vector.extract_strided_slice %200 {offsets = [0, 96], sizes = [2, 32], strides = [1, 1]} : vector<2x128xf32> to vector<2x32xf32>
    %210 = arith.mulf %207, %191 : vector<2x32xf32>
    %211 = arith.mulf %206, %209 : vector<2x32xf32>
    %212 = arith.addf %210, %211 : vector<2x32xf32>
    %213 = math.tanh %212 : vector<2x32xf32>
    %214 = arith.mulf %208, %213 : vector<2x32xf32>
    %215 = vector.broadcast %7 : vector<1x32xf32> to vector<2x32xf32>
    %216 = arith.mulf %214, %215 : vector<2x32xf32>
    %cst_46 = arith.constant dense<0.000000e+00> : vector<2xf32>
    %217 = vector.multi_reduction <add>, %216, %cst_46 [1] : vector<2x32xf32> to vector<2xf32>
    %218 = vector.shape_cast %217 : vector<2xf32> to vector<2x1xf32>
    %cst_47 = arith.constant dense<0.000000e+00> : vector<2x128xf32>
    %219 = tpu.matmul %214, %3, %cst_47 {dimension_numbers = #tpu.dot_dimension_numbers<[1], [0], [0], [1], [0, 0, 1, 1], [], []>} : vector<2x32xf32>, vector<32x128xf32>, vector<2x128xf32> -> vector<2x128xf32>
    %220 = arith.addf %174, %219 : vector<2x128xf32>
    %221 = math.tanh %220 : vector<2x128xf32>
    %222 = vector.extract_strided_slice %221 {offsets = [0, 0], sizes = [2, 96], strides = [1, 1]} : vector<2x128xf32> to vector<2x96xf32>
    %cst_48 = arith.constant 5.000000e-01 : f32
    %223 = vector.broadcast %cst_48 : f32 to vector<2x96xf32>
    %224 = arith.mulf %223, %222 : vector<2x96xf32>
    %cst_49 = arith.constant 5.000000e-01 : f32
    %225 = vector.broadcast %cst_49 : f32 to vector<2x96xf32>
    %226 = arith.addf %224, %225 : vector<2x96xf32>
    %227 = vector.extract_strided_slice %226 {offsets = [0, 0], sizes = [2, 32], strides = [1, 1]} : vector<2x96xf32> to vector<2x32xf32>
    %228 = vector.extract_strided_slice %226 {offsets = [0, 32], sizes = [2, 32], strides = [1, 1]} : vector<2x96xf32> to vector<2x32xf32>
    %229 = vector.extract_strided_slice %226 {offsets = [0, 64], sizes = [2, 32], strides = [1, 1]} : vector<2x96xf32> to vector<2x32xf32>
    %230 = vector.extract_strided_slice %221 {offsets = [0, 96], sizes = [2, 32], strides = [1, 1]} : vector<2x128xf32> to vector<2x32xf32>
    %231 = arith.mulf %228, %212 : vector<2x32xf32>
    %232 = arith.mulf %227, %230 : vector<2x32xf32>
    %233 = arith.addf %231, %232 : vector<2x32xf32>
    %234 = math.tanh %233 : vector<2x32xf32>
    %235 = arith.mulf %229, %234 : vector<2x32xf32>
    %236 = vector.broadcast %7 : vector<1x32xf32> to vector<2x32xf32>
    %237 = arith.mulf %235, %236 : vector<2x32xf32>
    %cst_50 = arith.constant dense<0.000000e+00> : vector<2xf32>
    %238 = vector.multi_reduction <add>, %237, %cst_50 [1] : vector<2x32xf32> to vector<2xf32>
    %239 = vector.shape_cast %238 : vector<2xf32> to vector<2x1xf32>
    %cst_51 = arith.constant dense<0.000000e+00> : vector<2x128xf32>
    %240 = tpu.matmul %235, %3, %cst_51 {dimension_numbers = #tpu.dot_dimension_numbers<[1], [0], [0], [1], [0, 0, 1, 1], [], []>} : vector<2x32xf32>, vector<32x128xf32>, vector<2x128xf32> -> vector<2x128xf32>
    %241 = arith.addf %174, %240 : vector<2x128xf32>
    %242 = math.tanh %241 : vector<2x128xf32>
    %243 = vector.extract_strided_slice %242 {offsets = [0, 0], sizes = [2, 96], strides = [1, 1]} : vector<2x128xf32> to vector<2x96xf32>
    %cst_52 = arith.constant 5.000000e-01 : f32
    %244 = vector.broadcast %cst_52 : f32 to vector<2x96xf32>
    %245 = arith.mulf %244, %243 : vector<2x96xf32>
    %cst_53 = arith.constant 5.000000e-01 : f32
    %246 = vector.broadcast %cst_53 : f32 to vector<2x96xf32>
    %247 = arith.addf %245, %246 : vector<2x96xf32>
    %248 = vector.extract_strided_slice %247 {offsets = [0, 0], sizes = [2, 32], strides = [1, 1]} : vector<2x96xf32> to vector<2x32xf32>
    %249 = vector.extract_strided_slice %247 {offsets = [0, 32], sizes = [2, 32], strides = [1, 1]} : vector<2x96xf32> to vector<2x32xf32>
    %250 = vector.extract_strided_slice %247 {offsets = [0, 64], sizes = [2, 32], strides = [1, 1]} : vector<2x96xf32> to vector<2x32xf32>
    %251 = vector.extract_strided_slice %242 {offsets = [0, 96], sizes = [2, 32], strides = [1, 1]} : vector<2x128xf32> to vector<2x32xf32>
    %252 = arith.mulf %249, %233 : vector<2x32xf32>
    %253 = arith.mulf %248, %251 : vector<2x32xf32>
    %254 = arith.addf %252, %253 : vector<2x32xf32>
    %255 = math.tanh %254 : vector<2x32xf32>
    %256 = arith.mulf %250, %255 : vector<2x32xf32>
    %257 = vector.broadcast %7 : vector<1x32xf32> to vector<2x32xf32>
    %258 = arith.mulf %256, %257 : vector<2x32xf32>
    %cst_54 = arith.constant dense<0.000000e+00> : vector<2xf32>
    %259 = vector.multi_reduction <add>, %258, %cst_54 [1] : vector<2x32xf32> to vector<2xf32>
    %260 = vector.shape_cast %259 : vector<2xf32> to vector<2x1xf32>
    %cst_55 = arith.constant dense<0.000000e+00> : vector<2x128xf32>
    %261 = tpu.matmul %256, %3, %cst_55 {dimension_numbers = #tpu.dot_dimension_numbers<[1], [0], [0], [1], [0, 0, 1, 1], [], []>} : vector<2x32xf32>, vector<32x128xf32>, vector<2x128xf32> -> vector<2x128xf32>
    %262 = arith.addf %174, %261 : vector<2x128xf32>
    %263 = math.tanh %262 : vector<2x128xf32>
    %264 = vector.extract_strided_slice %263 {offsets = [0, 0], sizes = [2, 96], strides = [1, 1]} : vector<2x128xf32> to vector<2x96xf32>
    %cst_56 = arith.constant 5.000000e-01 : f32
    %265 = vector.broadcast %cst_56 : f32 to vector<2x96xf32>
    %266 = arith.mulf %265, %264 : vector<2x96xf32>
    %cst_57 = arith.constant 5.000000e-01 : f32
    %267 = vector.broadcast %cst_57 : f32 to vector<2x96xf32>
    %268 = arith.addf %266, %267 : vector<2x96xf32>
    %269 = vector.extract_strided_slice %268 {offsets = [0, 0], sizes = [2, 32], strides = [1, 1]} : vector<2x96xf32> to vector<2x32xf32>
    %270 = vector.extract_strided_slice %268 {offsets = [0, 32], sizes = [2, 32], strides = [1, 1]} : vector<2x96xf32> to vector<2x32xf32>
    %271 = vector.extract_strided_slice %268 {offsets = [0, 64], sizes = [2, 32], strides = [1, 1]} : vector<2x96xf32> to vector<2x32xf32>
    %272 = vector.extract_strided_slice %263 {offsets = [0, 96], sizes = [2, 32], strides = [1, 1]} : vector<2x128xf32> to vector<2x32xf32>
    %273 = arith.mulf %270, %254 : vector<2x32xf32>
    %274 = arith.mulf %269, %272 : vector<2x32xf32>
    %275 = arith.addf %273, %274 : vector<2x32xf32>
    %276 = math.tanh %275 : vector<2x32xf32>
    %277 = arith.mulf %271, %276 : vector<2x32xf32>
    %278 = vector.broadcast %7 : vector<1x32xf32> to vector<2x32xf32>
    %279 = arith.mulf %277, %278 : vector<2x32xf32>
    %cst_58 = arith.constant dense<0.000000e+00> : vector<2xf32>
    %280 = vector.multi_reduction <add>, %279, %cst_58 [1] : vector<2x32xf32> to vector<2xf32>
    %281 = vector.shape_cast %280 : vector<2xf32> to vector<2x1xf32>
    %cst_59 = arith.constant dense<0.000000e+00> : vector<2x128xf32>
    %282 = tpu.matmul %277, %3, %cst_59 {dimension_numbers = #tpu.dot_dimension_numbers<[1], [0], [0], [1], [0, 0, 1, 1], [], []>} : vector<2x32xf32>, vector<32x128xf32>, vector<2x128xf32> -> vector<2x128xf32>
    %283 = arith.addf %174, %282 : vector<2x128xf32>
    %284 = math.tanh %283 : vector<2x128xf32>
    %285 = vector.extract_strided_slice %284 {offsets = [0, 0], sizes = [2, 96], strides = [1, 1]} : vector<2x128xf32> to vector<2x96xf32>
    %cst_60 = arith.constant 5.000000e-01 : f32
    %286 = vector.broadcast %cst_60 : f32 to vector<2x96xf32>
    %287 = arith.mulf %286, %285 : vector<2x96xf32>
    %cst_61 = arith.constant 5.000000e-01 : f32
    %288 = vector.broadcast %cst_61 : f32 to vector<2x96xf32>
    %289 = arith.addf %287, %288 : vector<2x96xf32>
    %290 = vector.extract_strided_slice %289 {offsets = [0, 0], sizes = [2, 32], strides = [1, 1]} : vector<2x96xf32> to vector<2x32xf32>
    %291 = vector.extract_strided_slice %289 {offsets = [0, 32], sizes = [2, 32], strides = [1, 1]} : vector<2x96xf32> to vector<2x32xf32>
    %292 = vector.extract_strided_slice %289 {offsets = [0, 64], sizes = [2, 32], strides = [1, 1]} : vector<2x96xf32> to vector<2x32xf32>
    %293 = vector.extract_strided_slice %284 {offsets = [0, 96], sizes = [2, 32], strides = [1, 1]} : vector<2x128xf32> to vector<2x32xf32>
    %294 = arith.mulf %291, %275 : vector<2x32xf32>
    %295 = arith.mulf %290, %293 : vector<2x32xf32>
    %296 = arith.addf %294, %295 : vector<2x32xf32>
    %297 = math.tanh %296 : vector<2x32xf32>
    %298 = arith.mulf %292, %297 : vector<2x32xf32>
    %299 = vector.broadcast %7 : vector<1x32xf32> to vector<2x32xf32>
    %300 = arith.mulf %298, %299 : vector<2x32xf32>
    %cst_62 = arith.constant dense<0.000000e+00> : vector<2xf32>
    %301 = vector.multi_reduction <add>, %300, %cst_62 [1] : vector<2x32xf32> to vector<2xf32>
    %302 = vector.shape_cast %301 : vector<2xf32> to vector<2x1xf32>
    %cst_63 = arith.constant dense<0.000000e+00> : vector<2x128xf32>
    %303 = tpu.matmul %298, %3, %cst_63 {dimension_numbers = #tpu.dot_dimension_numbers<[1], [0], [0], [1], [0, 0, 1, 1], [], []>} : vector<2x32xf32>, vector<32x128xf32>, vector<2x128xf32> -> vector<2x128xf32>
    %304 = arith.addf %174, %303 : vector<2x128xf32>
    %305 = math.tanh %304 : vector<2x128xf32>
    %306 = vector.extract_strided_slice %305 {offsets = [0, 0], sizes = [2, 96], strides = [1, 1]} : vector<2x128xf32> to vector<2x96xf32>
    %cst_64 = arith.constant 5.000000e-01 : f32
    %307 = vector.broadcast %cst_64 : f32 to vector<2x96xf32>
    %308 = arith.mulf %307, %306 : vector<2x96xf32>
    %cst_65 = arith.constant 5.000000e-01 : f32
    %309 = vector.broadcast %cst_65 : f32 to vector<2x96xf32>
    %310 = arith.addf %308, %309 : vector<2x96xf32>
    %311 = vector.extract_strided_slice %310 {offsets = [0, 0], sizes = [2, 32], strides = [1, 1]} : vector<2x96xf32> to vector<2x32xf32>
    %312 = vector.extract_strided_slice %310 {offsets = [0, 32], sizes = [2, 32], strides = [1, 1]} : vector<2x96xf32> to vector<2x32xf32>
    %313 = vector.extract_strided_slice %310 {offsets = [0, 64], sizes = [2, 32], strides = [1, 1]} : vector<2x96xf32> to vector<2x32xf32>
    %314 = vector.extract_strided_slice %305 {offsets = [0, 96], sizes = [2, 32], strides = [1, 1]} : vector<2x128xf32> to vector<2x32xf32>
    %315 = arith.mulf %312, %296 : vector<2x32xf32>
    %316 = arith.mulf %311, %314 : vector<2x32xf32>
    %317 = arith.addf %315, %316 : vector<2x32xf32>
    %318 = math.tanh %317 : vector<2x32xf32>
    %319 = arith.mulf %313, %318 : vector<2x32xf32>
    %320 = vector.broadcast %7 : vector<1x32xf32> to vector<2x32xf32>
    %321 = arith.mulf %319, %320 : vector<2x32xf32>
    %cst_66 = arith.constant dense<0.000000e+00> : vector<2xf32>
    %322 = vector.multi_reduction <add>, %321, %cst_66 [1] : vector<2x32xf32> to vector<2xf32>
    %323 = vector.shape_cast %322 : vector<2xf32> to vector<2x1xf32>
    %cst_67 = arith.constant dense<0.000000e+00> : vector<2x128xf32>
    %324 = tpu.matmul %319, %3, %cst_67 {dimension_numbers = #tpu.dot_dimension_numbers<[1], [0], [0], [1], [0, 0, 1, 1], [], []>} : vector<2x32xf32>, vector<32x128xf32>, vector<2x128xf32> -> vector<2x128xf32>
    %325 = arith.addf %174, %324 : vector<2x128xf32>
    %326 = math.tanh %325 : vector<2x128xf32>
    %327 = vector.extract_strided_slice %326 {offsets = [0, 0], sizes = [2, 96], strides = [1, 1]} : vector<2x128xf32> to vector<2x96xf32>
    %cst_68 = arith.constant 5.000000e-01 : f32
    %328 = vector.broadcast %cst_68 : f32 to vector<2x96xf32>
    %329 = arith.mulf %328, %327 : vector<2x96xf32>
    %cst_69 = arith.constant 5.000000e-01 : f32
    %330 = vector.broadcast %cst_69 : f32 to vector<2x96xf32>
    %331 = arith.addf %329, %330 : vector<2x96xf32>
    %332 = vector.extract_strided_slice %331 {offsets = [0, 0], sizes = [2, 32], strides = [1, 1]} : vector<2x96xf32> to vector<2x32xf32>
    %333 = vector.extract_strided_slice %331 {offsets = [0, 32], sizes = [2, 32], strides = [1, 1]} : vector<2x96xf32> to vector<2x32xf32>
    %334 = vector.extract_strided_slice %331 {offsets = [0, 64], sizes = [2, 32], strides = [1, 1]} : vector<2x96xf32> to vector<2x32xf32>
    %335 = vector.extract_strided_slice %326 {offsets = [0, 96], sizes = [2, 32], strides = [1, 1]} : vector<2x128xf32> to vector<2x32xf32>
    %336 = arith.mulf %333, %317 : vector<2x32xf32>
    %337 = arith.mulf %332, %335 : vector<2x32xf32>
    %338 = arith.addf %336, %337 : vector<2x32xf32>
    %339 = math.tanh %338 : vector<2x32xf32>
    %340 = arith.mulf %334, %339 : vector<2x32xf32>
    %341 = vector.broadcast %7 : vector<1x32xf32> to vector<2x32xf32>
    %342 = arith.mulf %340, %341 : vector<2x32xf32>
    %cst_70 = arith.constant dense<0.000000e+00> : vector<2xf32>
    %343 = vector.multi_reduction <add>, %342, %cst_70 [1] : vector<2x32xf32> to vector<2xf32>
    %344 = vector.shape_cast %343 : vector<2xf32> to vector<2x1xf32>
    %345 = tpu.concatenate %197, %218, %239, %260, %281, %302, %323, %344 in 1 : vector<2x1xf32>, vector<2x1xf32>, vector<2x1xf32>, vector<2x1xf32>, vector<2x1xf32>, vector<2x1xf32>, vector<2x1xf32>, vector<2x1xf32> -> vector<2x8xf32>
    %346 = vector.broadcast %8 : vector<1x1xf32> to vector<2x8xf32>
    %347 = arith.addf %345, %346 : vector<2x8xf32>
    %c0_71 = arith.constant 0 : index
    %c0_72 = arith.constant 0 : index
    %348 = vector.load %arg3[%c0_71, %c0_72] : memref<2x8xf32, #tpu.memory_space<vmem>>, vector<2x8xf32>
    tpu.vector_store %arg3[%c0_71, %c0_72], %347 {strides = array<i32>} : memref<2x8xf32, #tpu.memory_space<vmem>>, vector<2x8xf32>,
    return
  }
}

</mosaic_0001>

<bundles_post_ra>
// kernel: tpu_custom_call.1
= control target key start
LH: loop header
LB: loop body
LE: loop exit
PB: predicated region body
PF: predicated region fallthrough
CT: control target
= control target key end

     0   :  { %8 = vsyncpa [#allocation3], 0  ;;  %s1378_s0 = inlined_call_operand.vmem [shape: f32[8,2], index: 0, kind: input, shape index: {}]   ;;  %s1379_s1 = inlined_call_operand.hbm [shape: f32[34,128], index: 1, kind: input, shape index: {}]   ;;  %s1380_s2 = inlined_call_operand.hbm [shape: f32[66,128], index: 2, kind: input, shape index: {}]   ;;  %s1381_s3 = inlined_call_operand.hbm [shape: f32[2,8], index: 3, kind: output, shape index: {}]  }
   0x1   :  { %9 = vsyncpa [#allocation6], 0 }
   0x2   :  { %10 = vsyncpa [#allocation4], 0  ;;  %s17_s14 = sshll.u32 %s1379_s1, 4  ;;  %s1180_s15 = smov [#allocation2]   ;;  %s18_s14 = int_to_ptr.hbm [resolvable:$true] %s17_s14 }
   0x3   :  { %s19_s16 = sshll.u32 %s1180_s15, 4  ;;  %s30_s19 = sshll.u32 %s1380_s2, 4  ;;  %s20_s16 = int_to_ptr.vmem [resolvable:$true] %s19_s16  ;;  %s31_s19 = int_to_ptr.hbm [resolvable:$true] %s30_s19 }
   0x4   :  { %s1181_s20 = smov 128   ;;  %s1182_s21 = smov 8  }
   0x5   :  { %25 = dma.hbm_to_vmem [thread:$0]  %s18_s14, 640, %s20_s16, [#allocation3], %s1181_s20, %s1181_s20, %s1182_s21  }
   0x6   :  { %s1183_s22 = smov [#allocation5]  }
   0x7   :  { %s32_s23 = sshll.u32 %s1183_s22, 4  ;;  %s33_s23 = int_to_ptr.vmem [resolvable:$true] %s32_s23 }
   0x8   :  { %38 = dma.hbm_to_vmem [thread:$0]  %s31_s19, 1152, %s33_s23, [#allocation6], %s1181_s20, %s1181_s20, %s1182_s21  }
   0x9   :  { %1174 = dma.done.wait [#allocation3], 640  }
   0xa   :  { %1175 = vsyncadd [#allocation3], 4294966656 }
   0xb   :  { %1176 = dma.done.wait [#allocation6], 1152  }
   0xc   :  { %1177 = vsyncadd [#allocation6], 4294966144  ;;  %v65_v0 = vlaneseq  ;;  %v50_v2 = vld [vmem:[#allocation2 + $0x18] sm:$0xff]  ;;  %v49_v3 = vld [vmem:[#allocation2 + $0x10] sm:$0xff]  ;;  %v1184_v8 = vmov 0.0   ;;  %s1186_s24 = smov 64  }
   0xd   :  { %154 = vmatpush.msra.mxu0 %v50_v2  ;;  %v1218_v4 = vld [vmem:[%s1378_s0] sm:$0xff]  ;;  %200 = vmatpush.msra.mxu1 %v50_v2  ;;  %v48_v5 = vld [vmem:[#allocation2 + $0x8] sm:$0xff]  ;;  %s1185_s0 = smov 32   ;;  %vm138_vm0 = vcmask 261120   ;;  %vm582_vm1 = vcmask 254976   ;;  %s1187_s25 = smov 96  }
   0xe   :  { %v66_v1 = vshrl.u32 %v65_v0, 7  ;;  %v64_v6 = vperm.slane %v1218_v4, 0  ;;  %246 = vmatpush.msra.mxu2 %v50_v2  ;;  %292 = vmatpush.msra.mxu3 %v50_v2  ;;  %v47_v7 = vld [vmem:[#allocation2] sm:$0xff]  ;;  %v71_v27 = vperm.slane %v1218_v4, 1  ;;  %v78_v45 = vperm.slane %v1218_v4, 2  ;;  %s1188_s27 = smov [#allocation7]  }
   0xf   :  { %155 = vmatpush.msra.mxu0 %v49_v3  ;;  %201 = vmatpush.msra.mxu1 %v49_v3  ;;  %v1222_v9 = vld [vmem:[#allocation2 + $0x20] ss:$0 sm:$0xff]  ;;  %v1225_v12 = vld [vmem:[#allocation2 + $0x21] ss:$0 sm:$0xff]  ;;  %v85_v57 = vperm.slane %v1218_v4, 3  ;;  %vm964_vm2 = vcmask 7168  }
  0x10   :  { %1031 = vset.pattern.permute.xlu0 %v66_v1  ;;  %1032 = vset.pattern.permute.xlu2 %v66_v1  ;;  %vm966_vm3 = vcmask 15360   ;;  %vm968_vm4 = vcmask 23552   ;;  %vm970_vm5 = vcmask 31744   ;;  %vm972_vm6 = vcmask 39936   ;;  %s992_s28 = sshll.u32 %s1188_s27, 4  ;;  %s994_s4 = sshll.u32 %s1381_s3, 4  ;;  %s993_s28 = int_to_ptr.vmem [resolvable:$true] %s992_s28  ;;  %s995_s4 = int_to_ptr.hbm [resolvable:$true] %s994_s4 }
  0x11   :  { %1033 = vset.pattern.permute.xlu1 %v66_v1  ;;  %247 = vmatpush.msra.mxu2 %v49_v3  ;;  %vm974_vm7 = vcmask 48128   ;;  %vm976_vm8 = vcmask 56320   ;;  %vm985_vm9 = vcmask 58368  }
  0x12   :  { %293 = vmatpush.msra.mxu3 %v49_v3  ;;  %156 = vmatpush.msra.mxu0 %v48_v5 }
  0x13   :  { %202 = vmatpush.msra.mxu1 %v48_v5  ;;  %248 = vmatpush.msra.mxu2 %v48_v5 }
  0x14   :  { %157 = vmatpush.msra.mxu0 %v47_v7  ;;  %294 = vmatpush.msra.mxu3 %v48_v5 }
  0x15   :  { %158 = vmatmul.f32.vlgmr.msra.gmra.mxu0 %v1184_v8  ;;  %203 = vmatpush.msra.mxu1 %v47_v7 }
  0x16   :  { %249 = vmatpush.msra.mxu2 %v47_v7  ;;  %295 = vmatpush.msra.mxu3 %v47_v7 }
  0x17   :  { %338 = vmatpush.msrb.mxu0 %v50_v2  ;;  %384 = vmatpush.msrb.mxu1 %v50_v2 }
  0x18   :  { %69 = vperm.xlu0 %1031, %v64_v6   ;;  %430 = vmatpush.msrb.mxu2 %v50_v2 }
  0x19   :  { %476 = vmatpush.msrb.mxu3 %v50_v2  ;;  %339 = vmatpush.msrb.mxu0 %v49_v3 }
  0x1a   :  { %385 = vmatpush.msrb.mxu1 %v49_v3  ;;  %431 = vmatpush.msrb.mxu2 %v49_v3 }
  0x1b   :  { %477 = vmatpush.msrb.mxu3 %v49_v3  ;;  %340 = vmatpush.msrb.mxu0 %v48_v5 }
  0x1c   :  { %386 = vmatpush.msrb.mxu1 %v48_v5  ;;  %432 = vmatpush.msrb.mxu2 %v48_v5 }
  0x1d   :  { %478 = vmatpush.msrb.mxu3 %v48_v5  ;;  %341 = vmatpush.msrb.mxu0 %v47_v7 }
  0x1e   :  { %387 = vmatpush.msrb.mxu1 %v47_v7  ;;  %433 = vmatpush.msrb.mxu2 %v47_v7 }
  0x1f   :  { %479 = vmatpush.msrb.mxu3 %v47_v7 }
  0x8a   :  { %v70_v10 = vpop.permute.xlu0 %69 }
  0x8b   :  { %v121_v11 = vmul.f32 %v1222_v9, %v70_v10 }
  0x8d   :  { %v130_v13 = vadd.f32 %v1225_v12, %v121_v11 }
  0x92   :  { %v159_v14 = vpop.f32.mrf.mxu0 }
  0x93   :  { %v162_v15 = vadd.f32 %v159_v14, %v130_v13 }
  0x95   :  { %1038 = vtanh.f32 %v162_v15  ;;  %v92_v15 = vperm.slane %v1218_v4, 4 }
  0x9b   :  { %v1039_v16 = vpop.eup %1038 }
  0x9c   :  { %168 = vrot.lane.b32.xlu0 %v1039_v16, %s1185_s0  ;;  %v164_v17 = vmul.f32 0.5, %v1039_v16 }
  0x9e   :  { %v165_v18 = vadd.f32 0.5, %v164_v17 }
  0xa0   :  { %v166_v21 = vmul.f32 0.0, %v165_v18 }
 0x10e   :  { %v169_v19 = vpop.permute.xlu0 %168 }
 0x10f   :  { %v171_v20 = vmul.f32 %v169_v19, %v165_v18 }
 0x111   :  { %173 = vrot.lane.b32.xlu1 %v171_v20, %s1185_s0 }
 0x183   :  { %v174_v22 = vpop.permute.xlu1 %173 }
 0x184   :  { %v176_v23 = vadd.f32 %v174_v22, %v166_v21 }
 0x186   :  { %1040 = vtanh.f32 %v176_v23 }
 0x18c   :  { %v1041_v24 = vpop.eup %1040 }
 0x18d   :  { %179 = vrot.lane.b32.xlu1 %v1041_v24, %s1185_s0 }
 0x1ff   :  { %v180_v25 = vpop.permute.xlu1 %179 }
 0x200   :  { %v182_v26 = vmul.f32 %v180_v25, %v165_v18 }
 0x202   :  { %184 = vrot.lane.b32.xlu2 %v182_v26, %s1186_s24 }
 0x20a   :  { %76 = vperm.xlu2 %1032, %v71_v27  }
 0x25c   :  { %v185_v28 = vpop.permute.xlu2 %184 }
 0x25d   :  { %1005 = vmatmul.msk.f32.vlgmr.msra.gmra.mxu1 %vm138_vm0, %v185_v28 }
 0x264   :  { %v77_v29 = vpop.permute.xlu2 %76 }
 0x265   :  { %v122_v30 = vmul.f32 %v1222_v9, %v77_v29 }
 0x267   :  { %v131_v31 = vadd.f32 %v1225_v12, %v122_v30 }
 0x2da   :  { %v205_v32 = vpop.f32.mrf.mxu1 }
 0x2db   :  { %v208_v33 = vadd.f32 %v205_v32, %v131_v31 }
 0x2dd   :  { %1042 = vtanh.f32 %v208_v33  ;;  %v99_v33 = vperm.slane %v1218_v4, 5 }
 0x2e3   :  { %v1043_v34 = vpop.eup %1042 }
 0x2e4   :  { %214 = vrot.lane.b32.xlu0 %v1043_v34, %s1185_s0  ;;  %v210_v35 = vmul.f32 0.5, %v1043_v34 }
 0x2e6   :  { %v211_v36 = vadd.f32 0.5, %v210_v35 }
 0x2e8   :  { %v212_v39 = vmul.f32 %v211_v36, %v176_v23 }
 0x356   :  { %v215_v37 = vpop.permute.xlu0 %214 }
 0x357   :  { %v217_v38 = vmul.f32 %v215_v37, %v211_v36 }
 0x359   :  { %219 = vrot.lane.b32.xlu1 %v217_v38, %s1185_s0 }
 0x361   :  { %83 = vperm.xlu1 %1033, %v78_v45  }
 0x3cb   :  { %v220_v40 = vpop.permute.xlu1 %219 }
 0x3cc   :  { %v222_v41 = vadd.f32 %v220_v40, %v212_v39 }
 0x3ce   :  { %1044 = vtanh.f32 %v222_v41 }
 0x3d3   :  { %v84_v47 = vpop.permute.xlu1 %83 }
 0x3d4   :  { %v1045_v42 = vpop.eup %1044  ;;  %v123_v48 = vmul.f32 %v1222_v9, %v84_v47 }
 0x3d5   :  { %225 = vrot.lane.b32.xlu2 %v1045_v42, %s1185_s0 }
 0x3d6   :  { %v132_v49 = vadd.f32 %v1225_v12, %v123_v48 }
 0x42f   :  { %v226_v43 = vpop.permute.xlu2 %225 }
 0x430   :  { %v228_v44 = vmul.f32 %v226_v43, %v211_v36 }
 0x432   :  { %230 = vrot.lane.b32.xlu0 %v228_v44, %s1186_s24 }
 0x4a4   :  { %v231_v46 = vpop.permute.xlu0 %230 }
 0x4a5   :  { %1006 = vmatmul.msk.f32.vlgmr.msra.gmra.mxu2 %vm138_vm0, %v231_v46 }
 0x528   :  { %v251_v50 = vpop.f32.mrf.mxu2 }
 0x529   :  { %v254_v51 = vadd.f32 %v251_v50, %v132_v49 }
 0x52b   :  { %1046 = vtanh.f32 %v254_v51  ;;  %v106_v51 = vperm.slane %v1218_v4, 6 }
 0x531   :  { %v1047_v52 = vpop.eup %1046 }
 0x532   :  { %260 = vrot.lane.b32.xlu2 %v1047_v52, %s1185_s0  ;;  %v256_v53 = vmul.f32 0.5, %v1047_v52 }
 0x534   :  { %v257_v54 = vadd.f32 0.5, %v256_v53 }
 0x536   :  { %v258_v58 = vmul.f32 %v257_v54, %v222_v41 }
 0x58c   :  { %v261_v55 = vpop.permute.xlu2 %260 }
 0x58d   :  { %v263_v56 = vmul.f32 %v261_v55, %v257_v54 }
 0x58f   :  { %265 = vrot.lane.b32.xlu0 %v263_v56, %s1185_s0 }
 0x597   :  { %90 = vperm.xlu0 %1031, %v85_v57  }
 0x601   :  { %v266_v59 = vpop.permute.xlu0 %265 }
 0x602   :  { %v268_v60 = vadd.f32 %v266_v59, %v258_v58 }
 0x604   :  { %1048 = vtanh.f32 %v268_v60 }
 0x609   :  { %v91_v1 = vpop.permute.xlu0 %90 }
 0x60a   :  { %v1049_v61 = vpop.eup %1048  ;;  %v124_v2 = vmul.f32 %v1222_v9, %v91_v1 }
 0x60b   :  { %271 = vrot.lane.b32.xlu1 %v1049_v61, %s1185_s0 }
 0x60c   :  { %v133_v3 = vadd.f32 %v1225_v12, %v124_v2 }
 0x67d   :  { %v272_v62 = vpop.permute.xlu1 %271 }
 0x67e   :  { %v274_v63 = vmul.f32 %v272_v62, %v257_v54 }
 0x680   :  { %276 = vrot.lane.b32.xlu2 %v274_v63, %s1186_s24 }
 0x6da   :  { %v277_v0 = vpop.permute.xlu2 %276 }
 0x6db   :  { %1007 = vmatmul.msk.f32.vlgmr.msra.gmra.mxu3 %vm138_vm0, %v277_v0 }
 0x75e   :  { %v297_v5 = vpop.f32.mrf.mxu3 }
 0x75f   :  { %v300_v6 = vadd.f32 %v297_v5, %v133_v3 }
 0x761   :  { %1050 = vtanh.f32 %v300_v6  ;;  %v113_v6 = vperm.slane %v1218_v4, 7 }
 0x767   :  { %v1051_v7 = vpop.eup %1050 }
 0x768   :  { %306 = vrot.lane.b32.xlu1 %v1051_v7, %s1185_s0  ;;  %v302_v10 = vmul.f32 0.5, %v1051_v7 }
 0x76a   :  { %v303_v11 = vadd.f32 0.5, %v302_v10 }
 0x76c   :  { %v304_v16 = vmul.f32 %v303_v11, %v268_v60 }
 0x7da   :  { %v307_v13 = vpop.permute.xlu1 %306 }
 0x7db   :  { %v309_v14 = vmul.f32 %v307_v13, %v303_v11 }
 0x7dd   :  { %311 = vrot.lane.b32.xlu2 %v309_v14, %s1185_s0 }
 0x7e5   :  { %97 = vperm.xlu2 %1032, %v92_v15  }
 0x837   :  { %v312_v17 = vpop.permute.xlu2 %311 }
 0x838   :  { %v314_v18 = vadd.f32 %v312_v17, %v304_v16 }
 0x83a   :  { %1052 = vtanh.f32 %v314_v18 }
 0x83f   :  { %v98_v23 = vpop.permute.xlu2 %97 }
 0x840   :  { %v1053_v19 = vpop.eup %1052  ;;  %v125_v24 = vmul.f32 %v1222_v9, %v98_v23 }
 0x841   :  { %317 = vrot.lane.b32.xlu0 %v1053_v19, %s1185_s0 }
 0x842   :  { %v134_v25 = vadd.f32 %v1225_v12, %v125_v24 }
 0x8b3   :  { %v318_v20 = vpop.permute.xlu0 %317 }
 0x8b4   :  { %v320_v21 = vmul.f32 %v318_v20, %v303_v11 }
 0x8b6   :  { %322 = vrot.lane.b32.xlu1 %v320_v21, %s1186_s24 }
 0x928   :  { %v323_v22 = vpop.permute.xlu1 %322 }
 0x929   :  { %1008 = vmatmul.msk.f32.vlgmr.msrb.gmra.mxu0 %vm138_vm0, %v323_v22 }
 0x9a6   :  { %v343_v26 = vpop.f32.mrf.mxu0 }
 0x9a7   :  { %v346_v27 = vadd.f32 %v343_v26, %v134_v25 }
 0x9a9   :  { %1054 = vtanh.f32 %v346_v27 }
 0x9af   :  { %v1055_v28 = vpop.eup %1054 }
 0x9b0   :  { %352 = vrot.lane.b32.xlu0 %v1055_v28, %s1185_s0  ;;  %v348_v29 = vmul.f32 0.5, %v1055_v28 }
 0x9b2   :  { %v349_v30 = vadd.f32 0.5, %v348_v29 }
 0x9b4   :  { %v350_v34 = vmul.f32 %v349_v30, %v314_v18 }
 0xa22   :  { %v353_v31 = vpop.permute.xlu0 %352 }
 0xa23   :  { %v355_v32 = vmul.f32 %v353_v31, %v349_v30  ;;  %v55_v31 = vld [vmem:[#allocation5 + $0x10] sm:$0xff] }
 0xa25   :  { %357 = vrot.lane.b32.xlu1 %v355_v32, %s1185_s0  ;;  %v58_v32 = vld [vmem:[#allocation5 + $0x28] sm:$0xff] }
 0xa2d   :  { %104 = vperm.xlu1 %1033, %v99_v33   ;;  %v54_v33 = vld [vmem:[#allocation5 + $0x8] sm:$0xff] }
 0xa97   :  { %v358_v35 = vpop.permute.xlu1 %357 }
 0xa98   :  { %v360_v36 = vadd.f32 %v358_v35, %v350_v34  ;;  %v57_v34 = vld [vmem:[#allocation5 + $0x20] sm:$0xff] }
 0xa9a   :  { %1056 = vtanh.f32 %v360_v36 }
 0xa9f   :  { %v105_v41 = vpop.permute.xlu1 %104 }
 0xaa0   :  { %v1057_v37 = vpop.eup %1056  ;;  %v126_v42 = vmul.f32 %v1222_v9, %v105_v41 }
 0xaa1   :  { %363 = vrot.lane.b32.xlu2 %v1057_v37, %s1185_s0  ;;  %v53_v37 = vld [vmem:[#allocation5] sm:$0xff] }
 0xaa2   :  { %v135_v43 = vadd.f32 %v1225_v12, %v126_v42 }
 0xafb   :  { %v364_v38 = vpop.permute.xlu2 %363 }
 0xafc   :  { %v366_v39 = vmul.f32 %v364_v38, %v349_v30  ;;  %v56_v30 = vld [vmem:[#allocation5 + $0x18] sm:$0xff] }
 0xafd   :  { %543 = vmatpush.msra.mxu1 %v56_v30  ;;  %603 = vmatpush.msra.mxu2 %v56_v30 }
 0xafe   :  { %368 = vrot.lane.b32.xlu0 %v366_v39, %s1186_s24  ;;  %657 = vmatpush.msra.mxu3 %v56_v30 }
 0xaff   :  { %544 = vmatpush.msra.mxu1 %v55_v31  ;;  %604 = vmatpush.msra.mxu2 %v55_v31 }
 0xb00   :  { %658 = vmatpush.msra.mxu3 %v55_v31 }
 0xb01   :  { %545 = vmatpush.msra.mxu1 %v54_v33  ;;  %605 = vmatpush.msra.mxu2 %v54_v33 }
 0xb02   :  { %659 = vmatpush.msra.mxu3 %v54_v33 }
 0xb03   :  { %546 = vmatpush.msra.mxu1 %v53_v37  ;;  %606 = vmatpush.msra.mxu2 %v53_v37 }
 0xb04   :  { %660 = vmatpush.msra.mxu3 %v53_v37 }
 0xb70   :  { %v369_v40 = vpop.permute.xlu0 %368 }
 0xb71   :  { %1009 = vmatmul.msk.f32.vlgmr.msrb.gmra.mxu1 %vm138_vm0, %v369_v40 }
 0xb72   :  { %765 = vmatpush.msrb.mxu1 %v56_v30 }
 0xb74   :  { %766 = vmatpush.msrb.mxu1 %v55_v31 }
 0xb76   :  { %767 = vmatpush.msrb.mxu1 %v54_v33 }
 0xb78   :  { %768 = vmatpush.msrb.mxu1 %v53_v37 }
 0xb79   :  { %547 = vmatmul.f32.vlgmr.msra.gmra.mxu1 %v1184_v8  ;;  %v1036_v8 = vld [vmem:[#allocation5 + $0x40] ss:$0 sm:$0xff] }
 0xbee   :  { %v389_v44 = vpop.f32.mrf.mxu1 }
 0xbef   :  { %v392_v45 = vadd.f32 %v389_v44, %v135_v43 }
 0xbf1   :  { %1058 = vtanh.f32 %v392_v45 }
 0xbf6   :  { %v548_v40 = vpop.f32.mrf.mxu1 }
 0xbf7   :  { %v1059_v46 = vpop.eup %1058 }
 0xbf8   :  { %398 = vrot.lane.b32.xlu2 %v1059_v46, %s1185_s0  ;;  %v394_v47 = vmul.f32 0.5, %v1059_v46 }
 0xbfa   :  { %v395_v48 = vadd.f32 0.5, %v394_v47 }
 0xbfc   :  { %v396_v52 = vmul.f32 %v395_v48, %v360_v36 }
 0xc52   :  { %v399_v49 = vpop.permute.xlu2 %398 }
 0xc53   :  { %v401_v50 = vmul.f32 %v399_v49, %v395_v48 }
 0xc55   :  { %403 = vrot.lane.b32.xlu0 %v401_v50, %s1185_s0 }
 0xc5d   :  { %111 = vperm.xlu0 %1031, %v106_v51  }
 0xcc7   :  { %v404_v53 = vpop.permute.xlu0 %403 }
 0xcc8   :  { %v406_v54 = vadd.f32 %v404_v53, %v396_v52 }
 0xcca   :  { %1060 = vtanh.f32 %v406_v54 }
 0xccf   :  { %v112_v59 = vpop.permute.xlu0 %111 }
 0xcd0   :  { %v1061_v55 = vpop.eup %1060  ;;  %v127_v60 = vmul.f32 %v1222_v9, %v112_v59 }
 0xcd1   :  { %409 = vrot.lane.b32.xlu1 %v1061_v55, %s1185_s0 }
 0xcd2   :  { %v136_v61 = vadd.f32 %v1225_v12, %v127_v60 }
 0xd43   :  { %v410_v56 = vpop.permute.xlu1 %409 }
 0xd44   :  { %v412_v57 = vmul.f32 %v410_v56, %v395_v48 }
 0xd46   :  { %414 = vrot.lane.b32.xlu2 %v412_v57, %s1186_s24 }
 0xda0   :  { %v415_v58 = vpop.permute.xlu2 %414 }
 0xda1   :  { %1010 = vmatmul.msk.f32.vlgmr.msrb.gmra.mxu2 %vm138_vm0, %v415_v58 }
 0xda2   :  { %819 = vmatpush.msrb.mxu2 %v56_v30 }
 0xda4   :  { %820 = vmatpush.msrb.mxu2 %v55_v31 }
 0xda6   :  { %821 = vmatpush.msrb.mxu2 %v54_v33 }
 0xda8   :  { %822 = vmatpush.msrb.mxu2 %v53_v37 }
 0xe24   :  { %v435_v62 = vpop.f32.mrf.mxu2 }
 0xe25   :  { %v438_v63 = vadd.f32 %v435_v62, %v136_v61 }
 0xe27   :  { %1062 = vtanh.f32 %v438_v63 }
 0xe2d   :  { %v1063_v0 = vpop.eup %1062 }
 0xe2e   :  { %444 = vrot.lane.b32.xlu1 %v1063_v0, %s1185_s0  ;;  %v440_v1 = vmul.f32 0.5, %v1063_v0 }
 0xe30   :  { %v441_v2 = vadd.f32 0.5, %v440_v1 }
 0xe32   :  { %v442_v7 = vmul.f32 %v441_v2, %v406_v54 }
 0xea0   :  { %v445_v3 = vpop.permute.xlu1 %444 }
 0xea1   :  { %v447_v5 = vmul.f32 %v445_v3, %v441_v2 }
 0xea3   :  { %449 = vrot.lane.b32.xlu2 %v447_v5, %s1185_s0 }
 0xeab   :  { %118 = vperm.xlu2 %1032, %v113_v6  }
 0xefd   :  { %v450_v10 = vpop.permute.xlu2 %449 }
 0xefe   :  { %v452_v11 = vadd.f32 %v450_v10, %v442_v7 }
 0xf00   :  { %1064 = vtanh.f32 %v452_v11 }
 0xf05   :  { %v119_v17 = vpop.permute.xlu2 %118 }
 0xf06   :  { %v1065_v13 = vpop.eup %1064  ;;  %v128_v18 = vmul.f32 %v1222_v9, %v119_v17  ;;  %v60_v9 = vld [vmem:[#allocation5 + $0x38] sm:$0xff] }
 0xf07   :  { %455 = vrot.lane.b32.xlu0 %v1065_v13, %s1185_s0  ;;  %523 = vmatpush.msra.mxu0 %v60_v9 }
 0xf08   :  { %v137_v4 = vadd.f32 %v1225_v12, %v128_v18  ;;  %v59_v12 = vld [vmem:[#allocation5 + $0x30] sm:$0xff] }
 0xf09   :  { %524 = vmatpush.msra.mxu0 %v59_v12 }
 0xf0b   :  { %525 = vmatpush.msra.mxu0 %v58_v32 }
 0xf0d   :  { %526 = vmatpush.msra.mxu0 %v57_v34 }
 0xf0f   :  { %711 = vmatpush.msrb.mxu0 %v56_v30 }
 0xf11   :  { %712 = vmatpush.msrb.mxu0 %v55_v31 }
 0xf13   :  { %713 = vmatpush.msrb.mxu0 %v54_v33 }
 0xf15   :  { %714 = vmatpush.msrb.mxu0 %v53_v37 }
 0xf79   :  { %v456_v14 = vpop.permute.xlu0 %455 }
 0xf7a   :  { %v458_v15 = vmul.f32 %v456_v14, %v441_v2 }
 0xf7c   :  { %460 = vrot.lane.b32.xlu1 %v458_v15, %s1186_s24 }
 0xfee   :  { %v461_v16 = vpop.permute.xlu1 %460 }
 0xfef   :  { %1011 = vmatmul.msk.f32.vlgmr.msrb.gmra.mxu3 %vm138_vm0, %v461_v16 }
 0xff0   :  { %873 = vmatpush.msrb.mxu3 %v56_v30 }
 0xff2   :  { %874 = vmatpush.msrb.mxu3 %v55_v31 }
 0xff4   :  { %875 = vmatpush.msrb.mxu3 %v54_v33 }
 0xff6   :  { %876 = vmatpush.msrb.mxu3 %v53_v37 }
0x1072   :  { %v481_v19 = vpop.f32.mrf.mxu3 }
0x1073   :  { %v484_v20 = vadd.f32 %v481_v19, %v137_v4 }
0x1075   :  { %1066 = vtanh.f32 %v484_v20 }
0x107b   :  { %v1067_v21 = vpop.eup %1066 }
0x107c   :  { %490 = vrot.lane.b32.xlu0 %v1067_v21, %s1185_s0  ;;  %v486_v22 = vmul.f32 0.5, %v1067_v21 }
0x107e   :  { %v487_v23 = vadd.f32 0.5, %v486_v22 }
0x1080   :  { %v488_v26 = vmul.f32 %v487_v23, %v452_v11 }
0x10ee   :  { %v491_v24 = vpop.permute.xlu0 %490 }
0x10ef   :  { %v493_v25 = vmul.f32 %v491_v24, %v487_v23 }
0x10f1   :  { %495 = vrot.lane.b32.xlu1 %v493_v25, %s1185_s0 }
0x1163   :  { %v496_v27 = vpop.permute.xlu1 %495 }
0x1164   :  { %v498_v28 = vadd.f32 %v496_v27, %v488_v26 }
0x1166   :  { %1068 = vtanh.f32 %v498_v28 }
0x116c   :  { %v1069_v29 = vpop.eup %1068 }
0x116d   :  { %501 = vrot.lane.b32.xlu2 %v1069_v29, %s1185_s0 }
0x11c7   :  { %v502_v35 = vpop.permute.xlu2 %501 }
0x11c8   :  { %v504_v36 = vmul.f32 %v502_v35, %v487_v23 }
0x11ca   :  { %507 = vrot.lane.b32.xlu0 %v504_v36, %s1186_s24 }
0x123c   :  { %v508_v38 = vpop.permute.xlu0 %507 }
0x123d   :  { %1012 = vmatmul.msk.f32.vlgmr.msra.gmra.mxu0 %vm138_vm0, %v508_v38 }
0x123e   :  { %927 = vmatpush.msra.mxu0 %v56_v30 }
0x1240   :  { %928 = vmatpush.msra.mxu0 %v55_v31 }
0x1242   :  { %929 = vmatpush.msra.mxu0 %v54_v33 }
0x1244   :  { %930 = vmatpush.msra.mxu0 %v53_v37 }
0x12ba   :  { %v528_v39 = vpop.f32.mrf.mxu0 }
0x12bb   :  { %v1290_v41 = vadd.f32 %v1036_v8, %v528_v39 }
0x12bd   :  { %v551_v42 = vadd.f32 %v548_v40, %v1290_v41 }
0x12bf   :  { %1070 = vtanh.f32 %v551_v42 }
0x12c5   :  { %v1071_v43 = vpop.eup %1070 }
0x12c6   :  { %557 = vrot.lane.b32.xlu1 %v1071_v43, %s1185_s0  ;;  %v553_v44 = vmul.f32 0.5, %v1071_v43 }
0x12c8   :  { %v554_v45 = vadd.f32 0.5, %v553_v44 }
0x12ca   :  { %v555_v48 = vmul.f32 0.0, %v554_v45 }
0x1338   :  { %v558_v46 = vpop.permute.xlu1 %557 }
0x1339   :  { %v560_v47 = vmul.f32 %v558_v46, %v554_v45 }
0x133b   :  { %562 = vrot.lane.b32.xlu2 %v560_v47, %s1185_s0 }
0x1395   :  { %v563_v49 = vpop.permute.xlu2 %562 }
0x1396   :  { %v565_v50 = vadd.f32 %v563_v49, %v555_v48 }
0x1398   :  { %1072 = vtanh.f32 %v565_v50 }
0x139e   :  { %v1073_v51 = vpop.eup %1072 }
0x139f   :  { %568 = vrot.lane.b32.xlu0 %v1073_v51, %s1185_s0 }
0x1411   :  { %v569_v52 = vpop.permute.xlu0 %568 }
0x1412   :  { %v1296_v53 = vmul.f32 %v569_v52, %v554_v45 }
0x1414   :  { %587 = vrot.lane.b32.xlu1 %v1296_v53, %s1186_s24 }
0x1486   :  { %v588_v54 = vpop.permute.xlu1 %587 }
0x1487   :  { %1013 = vmatmul.msk.f32.vlgmr.msra.gmra.mxu2 %vm138_vm0, %v588_v54 }
0x150a   :  { %v608_v55 = vpop.f32.mrf.mxu2 }
0x150b   :  { %v611_v56 = vadd.f32 %v608_v55, %v1290_v41 }
0x150d   :  { %1074 = vtanh.f32 %v611_v56 }
0x1513   :  { %v1075_v57 = vpop.eup %1074 }
0x1514   :  { %617 = vrot.lane.b32.xlu2 %v1075_v57, %s1185_s0  ;;  %v613_v58 = vmul.f32 0.5, %v1075_v57 }
0x1516   :  { %v614_v59 = vadd.f32 0.5, %v613_v58 }
0x1518   :  { %v615_v62 = vmul.f32 %v614_v59, %v565_v50 }
0x156e   :  { %v618_v60 = vpop.permute.xlu2 %617 }
0x156f   :  { %v620_v61 = vmul.f32 %v618_v60, %v614_v59 }
0x1571   :  { %622 = vrot.lane.b32.xlu0 %v620_v61, %s1185_s0 }
0x15e3   :  { %v623_v63 = vpop.permute.xlu0 %622 }
0x15e4   :  { %v625_v0 = vadd.f32 %v623_v63, %v615_v62 }
0x15e6   :  { %1076 = vtanh.f32 %v625_v0 }
0x15ec   :  { %v1077_v1 = vpop.eup %1076 }
0x15ed   :  { %628 = vrot.lane.b32.xlu1 %v1077_v1, %s1185_s0 }
0x165f   :  { %v629_v2 = vpop.permute.xlu1 %628 }
0x1660   :  { %v1305_v3 = vmul.f32 %v629_v2, %v614_v59 }
0x1662   :  { %641 = vrot.lane.b32.xlu2 %v1305_v3, %s1186_s24 }
0x16bc   :  { %v642_v5 = vpop.permute.xlu2 %641 }
0x16bd   :  { %1014 = vmatmul.msk.f32.vlgmr.msra.gmra.mxu3 %vm138_vm0, %v642_v5 }
0x1740   :  { %v662_v6 = vpop.f32.mrf.mxu3 }
0x1741   :  { %v665_v7 = vadd.f32 %v662_v6, %v1290_v41 }
0x1743   :  { %1078 = vtanh.f32 %v665_v7 }
0x1749   :  { %v1079_v10 = vpop.eup %1078 }
0x174a   :  { %671 = vrot.lane.b32.xlu0 %v1079_v10, %s1185_s0  ;;  %v667_v11 = vmul.f32 0.5, %v1079_v10 }
0x174c   :  { %v668_v13 = vadd.f32 0.5, %v667_v11 }
0x174e   :  { %v669_v16 = vmul.f32 %v668_v13, %v625_v0 }
0x17bc   :  { %v672_v14 = vpop.permute.xlu0 %671 }
0x17bd   :  { %v674_v15 = vmul.f32 %v672_v14, %v668_v13 }
0x17bf   :  { %676 = vrot.lane.b32.xlu1 %v674_v15, %s1185_s0  ;;  %v1037_v15 = vld [vmem:[#allocation5 + $0x41] ss:$0 sm:$0xff] }
0x1831   :  { %v677_v17 = vpop.permute.xlu1 %676 }
0x1832   :  { %v679_v18 = vadd.f32 %v677_v17, %v669_v16 }
0x1834   :  { %1080 = vtanh.f32 %v679_v18 }
0x183a   :  { %v1081_v4 = vpop.eup %1080 }
0x183b   :  { %682 = vrot.lane.b32.xlu2 %v1081_v4, %s1185_s0 }
0x1895   :  { %v683_v19 = vpop.permute.xlu2 %682 }
0x1896   :  { %v1314_v20 = vmul.f32 %v683_v19, %v668_v13 }
0x1898   :  { %695 = vrot.lane.b32.xlu0 %v1314_v20, %s1186_s24 }
0x190a   :  { %v696_v21 = vpop.permute.xlu0 %695 }
0x190b   :  { %1015 = vmatmul.msk.f32.vlgmr.msrb.gmra.mxu0 %vm138_vm0, %v696_v21 }
0x1988   :  { %v716_v22 = vpop.f32.mrf.mxu0 }
0x1989   :  { %v719_v23 = vadd.f32 %v716_v22, %v1290_v41 }
0x198b   :  { %1082 = vtanh.f32 %v719_v23 }
0x1991   :  { %v1083_v24 = vpop.eup %1082 }
0x1992   :  { %725 = vrot.lane.b32.xlu1 %v1083_v24, %s1185_s0  ;;  %v721_v25 = vmul.f32 0.5, %v1083_v24 }
0x1994   :  { %v722_v26 = vadd.f32 0.5, %v721_v25 }
0x1996   :  { %v723_v29 = vmul.f32 %v722_v26, %v679_v18 }
0x1a04   :  { %v726_v27 = vpop.permute.xlu1 %725 }
0x1a05   :  { %v728_v28 = vmul.f32 %v726_v27, %v722_v26 }
0x1a07   :  { %730 = vrot.lane.b32.xlu2 %v728_v28, %s1185_s0 }
0x1a61   :  { %v731_v9 = vpop.permute.xlu2 %730 }
0x1a62   :  { %v733_v12 = vadd.f32 %v731_v9, %v723_v29 }
0x1a64   :  { %1084 = vtanh.f32 %v733_v12 }
0x1a6a   :  { %v1085_v30 = vpop.eup %1084 }
0x1a6b   :  { %736 = vrot.lane.b32.xlu0 %v1085_v30, %s1185_s0 }
0x1add   :  { %v737_v31 = vpop.permute.xlu0 %736 }
0x1ade   :  { %v1323_v32 = vmul.f32 %v737_v31, %v722_v26 }
0x1ae0   :  { %749 = vrot.lane.b32.xlu1 %v1323_v32, %s1186_s24 }
0x1b52   :  { %v750_v33 = vpop.permute.xlu1 %749 }
0x1b53   :  { %1016 = vmatmul.msk.f32.vlgmr.msrb.gmra.mxu1 %vm138_vm0, %v750_v33 }
0x1bd0   :  { %v770_v34 = vpop.f32.mrf.mxu1 }
0x1bd1   :  { %v773_v35 = vadd.f32 %v770_v34, %v1290_v41 }
0x1bd3   :  { %1086 = vtanh.f32 %v773_v35 }
0x1bd9   :  { %v1087_v36 = vpop.eup %1086 }
0x1bda   :  { %779 = vrot.lane.b32.xlu2 %v1087_v36, %s1185_s0  ;;  %v775_v37 = vmul.f32 0.5, %v1087_v36 }
0x1bdc   :  { %v776_v38 = vadd.f32 0.5, %v775_v37 }
0x1bde   :  { %v777_v40 = vmul.f32 %v776_v38, %v733_v12 }
0x1c34   :  { %v780_v8 = vpop.permute.xlu2 %779 }
0x1c35   :  { %v782_v39 = vmul.f32 %v780_v8, %v776_v38 }
0x1c37   :  { %784 = vrot.lane.b32.xlu0 %v782_v39, %s1185_s0 }
0x1ca9   :  { %v785_v42 = vpop.permute.xlu0 %784 }
0x1caa   :  { %v787_v43 = vadd.f32 %v785_v42, %v777_v40 }
0x1cac   :  { %1088 = vtanh.f32 %v787_v43 }
0x1cb2   :  { %v1089_v44 = vpop.eup %1088 }
0x1cb3   :  { %790 = vrot.lane.b32.xlu1 %v1089_v44, %s1185_s0 }
0x1d25   :  { %v791_v45 = vpop.permute.xlu1 %790 }
0x1d26   :  { %v1332_v46 = vmul.f32 %v791_v45, %v776_v38 }
0x1d28   :  { %803 = vrot.lane.b32.xlu2 %v1332_v46, %s1186_s24 }
0x1d82   :  { %v804_v47 = vpop.permute.xlu2 %803 }
0x1d83   :  { %1017 = vmatmul.msk.f32.vlgmr.msrb.gmra.mxu2 %vm138_vm0, %v804_v47 }
0x1e06   :  { %v824_v48 = vpop.f32.mrf.mxu2 }
0x1e07   :  { %v827_v49 = vadd.f32 %v824_v48, %v1290_v41 }
0x1e09   :  { %1090 = vtanh.f32 %v827_v49 }
0x1e0f   :  { %v1091_v50 = vpop.eup %1090 }
0x1e10   :  { %833 = vrot.lane.b32.xlu0 %v1091_v50, %s1185_s0  ;;  %v829_v51 = vmul.f32 0.5, %v1091_v50 }
0x1e12   :  { %v830_v52 = vadd.f32 0.5, %v829_v51 }
0x1e14   :  { %v831_v56 = vmul.f32 %v830_v52, %v787_v43 }
0x1e82   :  { %v834_v54 = vpop.permute.xlu0 %833 }
0x1e83   :  { %v836_v55 = vmul.f32 %v834_v54, %v830_v52 }
0x1e85   :  { %838 = vrot.lane.b32.xlu1 %v836_v55, %s1185_s0 }
0x1ef7   :  { %v839_v57 = vpop.permute.xlu1 %838 }
0x1ef8   :  { %v841_v58 = vadd.f32 %v839_v57, %v831_v56 }
0x1efa   :  { %1092 = vtanh.f32 %v841_v58 }
0x1f00   :  { %v1093_v59 = vpop.eup %1092 }
0x1f01   :  { %844 = vrot.lane.b32.xlu2 %v1093_v59, %s1185_s0 }
0x1f5b   :  { %v845_v60 = vpop.permute.xlu2 %844 }
0x1f5c   :  { %v847_v61 = vmul.f32 %v845_v60, %v830_v52 }
0x1f5e   :  { %857 = vrot.lane.b32.xlu0 %v847_v61, %s1186_s24 }
0x1fd0   :  { %v858_v62 = vpop.permute.xlu0 %857 }
0x1fd1   :  { %1018 = vmatmul.msk.f32.vlgmr.msrb.gmra.mxu3 %vm138_vm0, %v858_v62 }
0x2054   :  { %v878_v63 = vpop.f32.mrf.mxu3 }
0x2055   :  { %v881_v0 = vadd.f32 %v878_v63, %v1290_v41 }
0x2057   :  { %1094 = vtanh.f32 %v881_v0 }
0x205d   :  { %v1095_v1 = vpop.eup %1094 }
0x205e   :  { %887 = vrot.lane.b32.xlu1 %v1095_v1, %s1185_s0  ;;  %v883_v2 = vmul.f32 0.5, %v1095_v1 }
0x2060   :  { %v884_v5 = vadd.f32 0.5, %v883_v2 }
0x2062   :  { %v885_v10 = vmul.f32 %v884_v5, %v841_v58 }
0x20d0   :  { %v888_v6 = vpop.permute.xlu1 %887 }
0x20d1   :  { %v890_v7 = vmul.f32 %v888_v6, %v884_v5 }
0x20d3   :  { %892 = vrot.lane.b32.xlu2 %v890_v7, %s1185_s0 }
0x212d   :  { %v893_v11 = vpop.permute.xlu2 %892 }
0x212e   :  { %v895_v13 = vadd.f32 %v893_v11, %v885_v10 }
0x2130   :  { %1096 = vtanh.f32 %v895_v13 }
0x2136   :  { %v1097_v14 = vpop.eup %1096 }
0x2137   :  { %898 = vrot.lane.b32.xlu0 %v1097_v14, %s1185_s0 }
0x213f   :  { %574 = vrot.lane.b32.xlu0 %v1037_v15, %s1186_s24 }
0x21a9   :  { %v899_v16 = vpop.permute.xlu0 %898 }
0x21aa   :  { %v901_v17 = vmul.f32 %v899_v16, %v884_v5 }
0x21ac   :  { %911 = vrot.lane.b32.xlu1 %v901_v17, %s1186_s24 }
0x21b1   :  { %v575_v18 = vpop.permute.xlu0 %574 }
0x21b2   :  { %v577_v4 = vmul.f32 %v575_v18, %v1296_v53  ;;  %v632_v19 = vmul.f32 %v1305_v3, %v575_v18  ;;  %v686_v21 = vmul.f32 %v1314_v20, %v575_v18  ;;  %v740_v3 = vmul.f32 %v1323_v32, %v575_v18  ;;  %v62_v20 = vld [vmem:[#allocation5 + $0x41] sm:$0x1] }
0x21b3   :  { %v902_v27 = vmul.f32 %v901_v17, %v575_v18  ;;  %v848_v33 = vmul.f32 %v847_v61, %v575_v18  ;;  %v794_v44 = vmul.f32 %v1332_v46, %v575_v18 }
0x21b4   :  { %579 = vrot.lane.b32.xlu1 %v577_v4, %s1186_s24 }
0x21bc   :  { %634 = vrot.lane.b32.xlu1 %v632_v19, %s1186_s24 }
0x21c4   :  { %688 = vrot.lane.b32.xlu1 %v686_v21, %s1186_s24 }
0x221e   :  { %v912_v22 = vpop.permute.xlu1 %911 }
0x221f   :  { %1019 = vmatmul.msk.f32.vlgmr.msra.gmra.mxu0 %vm138_vm0, %v912_v22 }
0x2226   :  { %v580_v23 = vpop.permute.xlu1 %579 }
0x2227   :  { %v583_v24 = vsel %vm582_vm1, %v580_v23, 0.0 }
0x2228   :  { %584 = vadd.xlane.f32.xlu0 %v583_v24 }
0x222e   :  { %v635_v25 = vpop.permute.xlu1 %634 }
0x222f   :  { %v637_v8 = vsel %vm582_vm1, %v635_v25, 0.0 }
0x2236   :  { %v689_v53 = vpop.permute.xlu1 %688 }
0x2237   :  { %v691_v26 = vsel %vm582_vm1, %v689_v53, 0.0 }
0x2238   :  { %692 = vadd.xlane.f32.xlu1 %v691_v26 }
0x223c   :  { %742 = vrot.lane.b32.xlu0 %v740_v3, %s1186_s24 }
0x2244   :  { %979 = vrot.lane.b32.xlu0 %v62_v20, %s1187_s25 }
0x224c   :  { %904 = vrot.lane.b32.xlu0 %v902_v27, %s1186_s24 }
0x229b   :  { %v585_v12 = vpop.xlane.xlu0 %584 }
0x229c   :  { %v932_v28 = vpop.f32.mrf.mxu0 }
0x229d   :  { %v935_v29 = vadd.f32 %v932_v28, %v1290_v41 }
0x229f   :  { %1098 = vtanh.f32 %v935_v29 }
0x22a5   :  { %v1099_v9 = vpop.eup %1098 }
0x22a6   :  { %941 = vrot.lane.b32.xlu2 %v1099_v9, %s1185_s0  ;;  %v937_v36 = vmul.f32 0.5, %v1099_v9 }
0x22a8   :  { %v938_v41 = vadd.f32 0.5, %v937_v36 }
0x22aa   :  { %v939_v39 = vmul.f32 %v938_v41, %v895_v13 }
0x22ab   :  { %v693_v52 = vpop.xlane.xlu1 %692 }
0x22ae   :  { %v743_v30 = vpop.permute.xlu0 %742 }
0x22af   :  { %v745_v31 = vsel %vm582_vm1, %v743_v30, 0.0 }
0x22b0   :  { %746 = vadd.xlane.f32.xlu1 %v745_v31 }
0x22b6   :  { %v980_v32 = vpop.permute.xlu0 %979 }
0x22b7   :  { %1020 = vpush %v980_v32 }
0x22be   :  { %v905_v34 = vpop.permute.xlu0 %904 }
0x22bf   :  { %v907_v35 = vsel %vm582_vm1, %v905_v34, 0.0 }
0x22c9   :  { %850 = vrot.lane.b32.xlu1 %v848_v33, %s1186_s24 }
0x22e8   :  { %s1021_s26 = spop %1020 }
0x22e9   :  { %v982_v6 = vstv %s1021_s26 }
0x22f3   :  { %908 = vadd.xlane.f32.xlu1 %v907_v35 }
0x2300   :  { %v942_v37 = vpop.permute.xlu2 %941 }
0x2301   :  { %v944_v38 = vmul.f32 %v942_v37, %v938_v41 }
0x2303   :  { %946 = vrot.lane.b32.xlu2 %v944_v38, %s1185_s0 }
0x2323   :  { %v747_v54 = vpop.xlane.xlu1 %746 }
0x232c   :  { %638 = vadd.xlane.f32.xlu2 %v637_v8 }
0x233b   :  { %v851_v55 = vpop.permute.xlu1 %850 }
0x233c   :  { %v853_v56 = vsel %vm582_vm1, %v851_v55, 0.0 }
0x235d   :  { %v947_v40 = vpop.permute.xlu2 %946 }
0x235e   :  { %v949_v42 = vadd.f32 %v947_v40, %v939_v39 }
0x2360   :  { %1100 = vtanh.f32 %v949_v42 }
0x2366   :  { %v1101_v43 = vpop.eup %1100  ;;  %v909_v1 = vpop.xlane.xlu1 %908 }
0x2367   :  { %952 = vrot.lane.b32.xlu2 %v1101_v43, %s1185_s0 }
0x236f   :  { %796 = vrot.lane.b32.xlu2 %v794_v44, %s1186_s24 }
0x239f   :  { %v639_v45 = vpop.xlane.xlu2 %638 }
0x23a0   :  { %v965_v58 = vsel %vm964_vm2, %v585_v12, %v639_v45 }
0x23a1   :  { %v967_v59 = vsel %vm966_vm3, %v965_v58, %v693_v52 }
0x23a2   :  { %v969_v62 = vsel %vm968_vm4, %v967_v59, %v747_v54 }
0x23c1   :  { %v953_v47 = vpop.permute.xlu2 %952 }
0x23c2   :  { %v955_v48 = vmul.f32 %v953_v47, %v938_v41 }
0x23c4   :  { %v956_v49 = vmul.f32 %v955_v48, %v575_v18 }
0x23c6   :  { %958 = vrot.lane.b32.xlu2 %v956_v49, %s1186_s24 }
0x23c9   :  { %v797_v50 = vpop.permute.xlu2 %796 }
0x23ca   :  { %v799_v51 = vsel %vm582_vm1, %v797_v50, 0.0 }
0x23cb   :  { %800 = vadd.xlane.f32.xlu0 %v799_v51 }
0x23ef   :  { %854 = vadd.xlane.f32.xlu2 %v853_v56 }
0x2420   :  { %v959_v57 = vpop.permute.xlu2 %958 }
0x2421   :  { %v961_v46 = vsel %vm582_vm1, %v959_v57, 0.0 }
0x2422   :  { %962 = vadd.xlane.f32.xlu0 %v961_v46 }
0x243e   :  { %v801_v60 = vpop.xlane.xlu0 %800 }
0x243f   :  { %v971_v63 = vsel %vm970_vm5, %v969_v62, %v801_v60 }
0x2462   :  { %v855_v61 = vpop.xlane.xlu2 %854 }
0x2463   :  { %v973_v0 = vsel %vm972_vm6, %v971_v63, %v855_v61 }
0x2464   :  { %v975_v5 = vsel %vm974_vm7, %v973_v0, %v909_v1 }
0x2495   :  { %v963_v2 = vpop.xlane.xlu0 %962 }
0x2496   :  { %v977_v7 = vsel %vm976_vm8, %v975_v5, %v963_v2 }
0x2497   :  { %v984_v10 = vadd.f32 %v982_v6, %v977_v7 }
0x2499   :  { %986 = vst.msk [vmem:[#allocation7] sm:$0x3] %vm985_vm9, %v984_v10 }
0x249a   :  { %997 = dma.vmem_to_hbm [thread:$0]  %s993_s28, 32, %s995_s4, [#allocation4]  }
0x249b   :  { %1178 = dma.done.wait [#allocation4], 32  }
0x249c   :  { %1179 = vsyncadd [#allocation4], 4294967264 }
0x249d   :  { %1002 = vsyncpa [#allocation3], 1 }
0x249e   :  { %1003 = vsyncpa [#allocation6], 1 }
0x249f   :  { %1004 = vsyncpa [#allocation4], 1 }

</bundles_post_ra>
